<compile_context>
chip_gen: v7x
topology: tpu7x:2x2x1
jax: 0.10.0
libtpu: 0.0.40
codegen_flags: <defaults>
</compile_context>

<pallas_src>
import numpy as np
import jax
import jax.numpy as jnp
from jax import lax
from jax.experimental import pallas as pl
from jax.experimental.pallas import tpu as pltpu


def _self_attention_kernel(x_ref, w_ref, b_ref, gamma_ref, o_ref,
                           q_s, k_s, v_s):
    qi = pl.program_id(1)               # q-tile index (inner grid axis)
    C8 = q_s.shape[0]
    C, N = v_s.shape
    tq = o_ref.shape[2]

    # --- Fused QKV projection, computed once per batch element and cached ----
    @pl.when(qi == 0)
    def _():
        x = x_ref[0]                                         # (C, N) f32
        qkv = jnp.dot(w_ref[...], x,
                      preferred_element_type=jnp.float32) + b_ref[...]  # (2*C8+C, N)
        q_s[...] = qkv[0:C8, :].astype(q_s.dtype)            # (C8, N) bf16
        k_s[...] = qkv[C8:2 * C8, :].astype(k_s.dtype)       # (C8, N) bf16
        v_s[...] = qkv[2 * C8:, :].astype(v_s.dtype)         # (C,  N) bf16

    q_start = pl.multiple_of(qi * tq, tq)
    q_tile = q_s[:, pl.ds(q_start, tq)]                      # (C8, tq) bf16

    # energy^T[j, i] = sum_c k[c, j] * q[c, i]  -> (N, tq); key-major so the big
    # matrix is produced (and later consumed) without any NxN transpose.
    e_t = lax.dot_general(k_s[...], q_tile, (((0,), (0,)), ((), ())),
                          preferred_element_type=jnp.float32)            # (N, tq) f32

    # Numerically-stable softmax over the key axis (axis 0), normalization deferred.
    m = jnp.max(e_t, axis=0, keepdims=True)                  # (1, tq)
    p = jnp.exp(e_t - m)                                     # (N, tq) unnormalized
    s = jnp.sum(p, axis=0, keepdims=True)                    # (1, tq)

    # out[c, i] = sum_j v[c, j] * p[j, i]    (plain A @ B, bf16 operands, f32 acc)
    out = lax.dot_general(v_s[...], p.astype(v_s.dtype), (((1,), (0,)), ((), ())),
                          preferred_element_type=jnp.float32)            # (C, tq)
    out = out * pl.reciprocal(s, approx=True)                # deferred normalization

    gamma = gamma_ref[0, 0]
    x_tile = x_ref[0, :, pl.ds(q_start, tq)]                 # (C, tq) f32 residual
    o_ref[0] = (gamma * out + x_tile).astype(o_ref.dtype)


def self_attention_pallas(x, wq, bq, wk, bk, wv, bv, gamma, *, tq=None):
    """x: (B, C, W, H) f32; wq/wk: (C//8, C); wv: (C, C); biases 1-D; gamma scalar."""
    B, C, W, H = x.shape
    N = W * H
    C8 = wq.shape[0]
    CT = 2 * C8 + C

    if tq is None:
        tq = N
        for cand in (512, 256, 128):
            if N % cand == 0:
                tq = cand
                break
    assert N % tq == 0, (N, tq)
    nq = N // tq

    x_flat = x.reshape(B, C, N).astype(jnp.float32)
    w_fused = jnp.concatenate([wq, wk, wv], axis=0).astype(jnp.float32)        # (CT, C)
    b_fused = jnp.concatenate([bq, bk, bv], axis=0).reshape(CT, 1).astype(jnp.float32)
    gamma2 = jnp.asarray(gamma, jnp.float32).reshape(1, 1)

    cost = pl.CostEstimate(
        flops=int(2 * B * (N * N * (C + C8) + N * C * CT)),
        transcendentals=int(B * N * N),
        bytes_accessed=int(2 * B * C * N * 4 + CT * C * 4 + CT * 4 + 4),
    )

    def run(single_buffer_consts):
        # Weights/biases have a constant block index across the whole grid; a
        # single VMEM buffer is enough (saves 1x copy of each invariant operand).
        pm = dict(pipeline_mode=pl.Buffered(1)) if single_buffer_consts else {}
        in_specs = [
            pl.BlockSpec((1, C, N), lambda b, q: (b, 0, 0)),        # x, per-batch
            pl.BlockSpec((CT, C), lambda b, q: (0, 0), **pm),       # fused W_qkv
            pl.BlockSpec((CT, 1), lambda b, q: (0, 0), **pm),       # fused b_qkv
            pl.BlockSpec(memory_space=pltpu.MemorySpace.SMEM),      # gamma scalar
        ]
        return pl.pallas_call(
            _self_attention_kernel,
            out_shape=jax.ShapeDtypeStruct((B, C, N), jnp.float32),
            grid=(B, nq),
            in_specs=in_specs,
            out_specs=pl.BlockSpec((1, C, tq), lambda b, q: (b, 0, q)),
            scratch_shapes=[
                pltpu.VMEM((C8, N), jnp.bfloat16),   # q cache (per batch)
                pltpu.VMEM((C8, N), jnp.bfloat16),   # k cache
                pltpu.VMEM((C, N), jnp.bfloat16),    # v cache
            ],
            compiler_params=pltpu.CompilerParams(
                dimension_semantics=("parallel", "arbitrary"),
                vmem_limit_bytes=48 * 1024 * 1024),
            cost_estimate=cost,
        )(x_flat, w_fused, b_fused, gamma2)

    try:
        out_flat = jax.block_until_ready(run(True))
    except Exception:
        # Fallback for jax versions without BlockSpec pipeline_mode support.
        out_flat = run(False)

    return out_flat.reshape(B, C, W, H)


def _reference(x, wq, bq, wk, bk, wv, bv, gamma):
    """Pure-JAX replica of SelfAttention.forward for a correctness check."""
    B, C, W, H = x.shape
    N = W * H
    xf = x.reshape(B, C, N)
    q = jnp.einsum('oc,bcn->bon', wq, xf) + bq[None, :, None]   # (B, C8, N)
    k = jnp.einsum('oc,bcn->bon', wk, xf) + bk[None, :, None]   # (B, C8, N)
    v = jnp.einsum('oc,bcn->bon', wv, xf) + bv[None, :, None]   # (B, C,  N)
    energy = jnp.einsum('bci,bcj->bij', q, k)                   # (B, N, N)
    attn = jax.nn.softmax(energy, axis=-1)
    out = jnp.einsum('bcj,bij->bci', v, attn)                   # (B, C, N)
    out = gamma * out + xf
    return out.reshape(B, C, W, H)


if __name__ == "__main__":
    key = jax.random.PRNGKey(0)
    B, C, W, H = 2, 32, 16, 16          # N = W*H = 256, C8 = 4
    C8 = C // 8
    ks = jax.random.split(key, 7)

    x = jax.random.normal(ks[0], (B, C, W, H), dtype=jnp.float32)
    wq = jax.random.normal(ks[1], (C8, C), dtype=jnp.float32) * 0.1
    bq = jax.random.normal(ks[2], (C8,), dtype=jnp.float32) * 0.1
    wk = jax.random.normal(ks[3], (C8, C), dtype=jnp.float32) * 0.1
    bk = jax.random.normal(ks[4], (C8,), dtype=jnp.float32) * 0.1
    wv = jax.random.normal(ks[5], (C, C), dtype=jnp.float32) * 0.1
    bv = jax.random.normal(ks[6], (C,), dtype=jnp.float32) * 0.1
    # gamma is zero-initialized in the PyTorch module (out == x); use a nonzero
    # value here so the attention path is actually exercised by the check.
    gamma = jnp.float32(0.5)

    # tq=128 -> 2 q-tiles per batch element, exercising the tiled/cached path.
    out = self_attention_pallas(x, wq, bq, wk, bk, wv, bv, gamma, tq=128)
    out = jax.block_until_ready(out)

    ref = _reference(x, wq, bq, wk, bk, wv, bv, gamma)
    assert out.shape == (B, C, W, H)
    # bf16 MXU operands (f32 accumulation) -> ~1e-2 level agreement with f32 ref.
    assert np.allclose(np.asarray(out), np.asarray(ref), rtol=2e-2, atol=2e-2), (
        float(np.max(np.abs(np.asarray(out) - np.asarray(ref)))))

    print("KERNEL_OK")
</pallas_src>

<mosaic_0001>
module attributes {stable_mosaic.version = 11 : i64} {
  func.func @_self_attention_kernel(%arg0: i32, %arg1: i32, %arg2: memref<1x32x256xf32, #tpu.memory_space<vmem>>, %arg3: memref<40x32xf32, #tpu.memory_space<vmem>>, %arg4: memref<40x1xf32, #tpu.memory_space<vmem>>, %arg5: memref<1x1xf32, #tpu.memory_space<smem>>, %arg6: memref<1x32x128xf32, #tpu.memory_space<vmem>>, %arg7: memref<4x256xbf16, #tpu.memory_space<vmem>>, %arg8: memref<4x256xbf16, #tpu.memory_space<vmem>>, %arg9: memref<32x256xbf16, #tpu.memory_space<vmem>>) attributes {dimension_semantics = [#tpu.dimension_semantics<parallel>, #tpu.dimension_semantics<arbitrary>], iteration_bounds = array<i64: 2, 2>, scalar_prefetch = 0 : i64, scratch_operands = 3 : i64, tpu.core_type = #tpu.core_type<tc>, window_params = [{transform_indices = @transform_0, window_bounds = array<i64: 1, 32, 256>}, {pipeline_mode = #tpu.pipeline_mode<synchronous>, transform_indices = @transform_1, window_bounds = array<i64: 40, 32>}, {pipeline_mode = #tpu.pipeline_mode<synchronous>, transform_indices = @transform_2, window_bounds = array<i64: 40, 1>}, {transform_indices = @transform_3, window_bounds = array<i64: 1, 1>}, {transform_indices = @transform_4, window_bounds = array<i64: 1, 32, 128>}]} {
    %c0_i32 = arith.constant 0 : i32
    %0 = arith.cmpi eq, %arg1, %c0_i32 : i32
    %1 = arith.extui %0 : i1 to i32
    %c0_i32_0 = arith.constant 0 : i32
    %2 = arith.cmpi ne, %1, %c0_i32_0 : i32
    scf.if %2 {
      %c0_15 = arith.constant 0 : index
      %c0_16 = arith.constant 0 : index
      %c0_17 = arith.constant 0 : index
      %32 = vector.load %arg2[%c0_15, %c0_16, %c0_17] : memref<1x32x256xf32, #tpu.memory_space<vmem>>, vector<1x32x256xf32>
      %33 = vector.shape_cast %32 : vector<1x32x256xf32> to vector<32x256xf32>
      %c0_18 = arith.constant 0 : index
      %c0_19 = arith.constant 0 : index
      %34 = vector.load %arg3[%c0_18, %c0_19] : memref<40x32xf32, #tpu.memory_space<vmem>>, vector<40x32xf32>
      %cst_20 = arith.constant dense<0.000000e+00> : vector<40x256xf32>
      %35 = tpu.matmul %34, %33, %cst_20 {dimension_numbers = #tpu.dot_dimension_numbers<[1], [0], [0], [1], [0, 0, 1, 1], [], []>} : vector<40x32xf32>, vector<32x256xf32>, vector<40x256xf32> -> vector<40x256xf32>
      %c0_21 = arith.constant 0 : index
      %c0_22 = arith.constant 0 : index
      %36 = vector.load %arg4[%c0_21, %c0_22] : memref<40x1xf32, #tpu.memory_space<vmem>>, vector<40x1xf32>
      %37 = vector.broadcast %36 : vector<40x1xf32> to vector<40x256xf32>
      %38 = arith.addf %35, %37 : vector<40x256xf32>
      %39 = vector.extract_strided_slice %38 {offsets = [0, 0], sizes = [4, 256], strides = [1, 1]} : vector<40x256xf32> to vector<4x256xf32>
      %40 = arith.truncf %39 : vector<4x256xf32> to vector<4x256xbf16>
      %c0_23 = arith.constant 0 : index
      %c0_24 = arith.constant 0 : index
      %41 = vector.load %arg7[%c0_23, %c0_24] : memref<4x256xbf16, #tpu.memory_space<vmem>>, vector<4x256xbf16>
      tpu.vector_store %arg7[%c0_23, %c0_24], %40 {strides = array<i32>} : memref<4x256xbf16, #tpu.memory_space<vmem>>, vector<4x256xbf16>,
      %42 = vector.extract_strided_slice %38 {offsets = [4, 0], sizes = [4, 256], strides = [1, 1]} : vector<40x256xf32> to vector<4x256xf32>
      %43 = arith.truncf %42 : vector<4x256xf32> to vector<4x256xbf16>
      %c0_25 = arith.constant 0 : index
      %c0_26 = arith.constant 0 : index
      %44 = vector.load %arg8[%c0_25, %c0_26] : memref<4x256xbf16, #tpu.memory_space<vmem>>, vector<4x256xbf16>
      tpu.vector_store %arg8[%c0_25, %c0_26], %43 {strides = array<i32>} : memref<4x256xbf16, #tpu.memory_space<vmem>>, vector<4x256xbf16>,
      %45 = vector.extract_strided_slice %38 {offsets = [8, 0], sizes = [32, 256], strides = [1, 1]} : vector<40x256xf32> to vector<32x256xf32>
      %46 = arith.truncf %45 : vector<32x256xf32> to vector<32x256xbf16>
      %c0_27 = arith.constant 0 : index
      %c0_28 = arith.constant 0 : index
      %47 = vector.load %arg9[%c0_27, %c0_28] : memref<32x256xbf16, #tpu.memory_space<vmem>>, vector<32x256xbf16>
      tpu.vector_store %arg9[%c0_27, %c0_28], %46 {strides = array<i32>} : memref<32x256xbf16, #tpu.memory_space<vmem>>, vector<32x256xbf16>,
    } else {
    }
    %c128_i32 = arith.constant 128 : i32
    %3 = arith.muli %arg1, %c128_i32 : i32
    %4 = tpu.assume_multiple %3, 128 : i32
    %c0 = arith.constant 0 : index
    %5 = arith.index_cast %4 : i32 to index
    %6 = vector.load %arg7[%c0, %5] : memref<4x256xbf16, #tpu.memory_space<vmem>>, vector<4x128xbf16>
    %c0_1 = arith.constant 0 : index
    %c0_2 = arith.constant 0 : index
    %7 = vector.load %arg8[%c0_1, %c0_2] : memref<4x256xbf16, #tpu.memory_space<vmem>>, vector<4x256xbf16>
    %cst = arith.constant dense<0.000000e+00> : vector<256x128xf32>
    %8 = tpu.matmul %7, %6, %cst {dimension_numbers = #tpu.dot_dimension_numbers<[0], [0], [1], [1], [0, 1, 1, 1], [], []>} : vector<4x256xbf16>, vector<4x128xbf16>, vector<256x128xf32> -> vector<256x128xf32>
    %cst_3 = arith.constant dense<0xFF800000> : vector<128xf32>
    %9 = vector.multi_reduction <maximumf>, %8, %cst_3 [0] : vector<256x128xf32> to vector<128xf32>
    %10 = vector.shape_cast %9 : vector<128xf32> to vector<1x128xf32>
    %11 = vector.broadcast %10 : vector<1x128xf32> to vector<256x128xf32>
    %12 = arith.subf %8, %11 : vector<256x128xf32>
    %13 = math.exp %12 : vector<256x128xf32>
    %cst_4 = arith.constant dense<0.000000e+00> : vector<128xf32>
    %14 = vector.multi_reduction <add>, %13, %cst_4 [0] : vector<256x128xf32> to vector<128xf32>
    %15 = vector.shape_cast %14 : vector<128xf32> to vector<1x128xf32>
    %c0_5 = arith.constant 0 : index
    %c0_6 = arith.constant 0 : index
    %16 = vector.load %arg9[%c0_5, %c0_6] : memref<32x256xbf16, #tpu.memory_space<vmem>>, vector<32x256xbf16>
    %17 = arith.truncf %13 : vector<256x128xf32> to vector<256x128xbf16>
    %cst_7 = arith.constant dense<0.000000e+00> : vector<32x128xf32>
    %18 = tpu.matmul %16, %17, %cst_7 {dimension_numbers = #tpu.dot_dimension_numbers<[1], [0], [0], [1], [0, 0, 1, 1], [], []>} : vector<32x256xbf16>, vector<256x128xbf16>, vector<32x128xf32> -> vector<32x128xf32>
    %19 = tpu.reciprocal %15 {approx = true} : vector<1x128xf32> -> vector<1x128xf32>
    %20 = vector.broadcast %19 : vector<1x128xf32> to vector<32x128xf32>
    %21 = arith.mulf %18, %20 : vector<32x128xf32>
    %c0_8 = arith.constant 0 : index
    %c0_9 = arith.constant 0 : index
    %22 = memref.load %arg5[%c0_8, %c0_9] : memref<1x1xf32, #tpu.memory_space<smem>>
    %c0_10 = arith.constant 0 : index
    %c0_11 = arith.constant 0 : index
    %23 = arith.index_cast %4 : i32 to index
    %24 = vector.load %arg2[%c0_10, %c0_11, %23] : memref<1x32x256xf32, #tpu.memory_space<vmem>>, vector<1x32x128xf32>
    %25 = vector.shape_cast %24 : vector<1x32x128xf32> to vector<32x128xf32>
    %26 = vector.broadcast %22 : f32 to vector<32x128xf32>
    %27 = arith.mulf %26, %21 : vector<32x128xf32>
    %28 = arith.addf %27, %25 : vector<32x128xf32>
    %c0_12 = arith.constant 0 : index
    %c0_13 = arith.constant 0 : index
    %c0_14 = arith.constant 0 : index
    %29 = vector.load %arg6[%c0_12, %c0_13, %c0_14] : memref<1x32x128xf32, #tpu.memory_space<vmem>>, vector<1x32x128xf32>
    %30 = vector.shape_cast %29 : vector<1x32x128xf32> to vector<32x128xf32>
    %31 = vector.shape_cast %28 : vector<32x128xf32> to vector<1x32x128xf32>
    tpu.vector_store %arg6[%c0_12, %c0_13, %c0_14], %31 {strides = array<i32>} : memref<1x32x128xf32, #tpu.memory_space<vmem>>, vector<1x32x128xf32>,
    return
  }
  func.func @transform_0(%arg0: i32, %arg1: i32) -> (i32, i32, i32) {
    %c0_i32 = arith.constant 0 : i32
    %c0_i32_0 = arith.constant 0 : i32
    %c0_i32_1 = arith.constant 0 : i32
    return %arg0, %c0_i32, %c0_i32_0 : i32, i32, i32
  }
  func.func @transform_1(%arg0: i32, %arg1: i32) -> (i32, i32) {
    %c0_i32 = arith.constant 0 : i32
    %c0_i32_0 = arith.constant 0 : i32
    %c0_i32_1 = arith.constant 0 : i32
    return %c0_i32, %c0_i32_0 : i32, i32
  }
  func.func @transform_2(%arg0: i32, %arg1: i32) -> (i32, i32) {
    %c0_i32 = arith.constant 0 : i32
    %c0_i32_0 = arith.constant 0 : i32
    %c0_i32_1 = arith.constant 0 : i32
    return %c0_i32, %c0_i32_0 : i32, i32
  }
  func.func @transform_3(%arg0: i32, %arg1: i32) -> (i32, i32) {
    %c0_i32 = arith.constant 0 : i32
    %c0_i32_0 = arith.constant 0 : i32
    %c0_i32_1 = arith.constant 0 : i32
    return %c0_i32, %c0_i32_0 : i32, i32
  }
  func.func @transform_4(%arg0: i32, %arg1: i32) -> (i32, i32, i32) {
    %c0_i32 = arith.constant 0 : i32
    %c0_i32_0 = arith.constant 0 : i32
    return %arg0, %c0_i32, %arg1 : i32, i32, i32
  }
}

module attributes {stable_mosaic.version = 11 : i64} {
  func.func @_self_attention_kernel(%arg0: i32, %arg1: i32, %arg2: memref<1x32x256xf32, #tpu.memory_space<vmem>>, %arg3: memref<40x32xf32, #tpu.memory_space<vmem>>, %arg4: memref<40x1xf32, #tpu.memory_space<vmem>>, %arg5: memref<1x1xf32, #tpu.memory_space<smem>>, %arg6: memref<1x32x128xf32, #tpu.memory_space<vmem>>, %arg7: memref<4x256xbf16, #tpu.memory_space<vmem>>, %arg8: memref<4x256xbf16, #tpu.memory_space<vmem>>, %arg9: memref<32x256xbf16, #tpu.memory_space<vmem>>) attributes {dimension_semantics = [#tpu.dimension_semantics<parallel>, #tpu.dimension_semantics<arbitrary>], iteration_bounds = array<i64: 2, 2>, scalar_prefetch = 0 : i64, scratch_operands = 3 : i64, tpu.core_type = #tpu.core_type<tc>, window_params = [{transform_indices = @transform_0, window_bounds = array<i64: 1, 32, 256>}, {pipeline_mode = #tpu.pipeline_mode<synchronous>, transform_indices = @transform_1, window_bounds = array<i64: 40, 32>}, {pipeline_mode = #tpu.pipeline_mode<synchronous>, transform_indices = @transform_2, window_bounds = array<i64: 40, 1>}, {transform_indices = @transform_3, window_bounds = array<i64: 1, 1>}, {transform_indices = @transform_4, window_bounds = array<i64: 1, 32, 128>}]} {
    %c0_i32 = arith.constant 0 : i32
    %0 = arith.cmpi eq, %arg1, %c0_i32 : i32
    %1 = arith.extui %0 : i1 to i32
    %c0_i32_0 = arith.constant 0 : i32
    %2 = arith.cmpi ne, %1, %c0_i32_0 : i32
    scf.if %2 {
      %c0_15 = arith.constant 0 : index
      %c0_16 = arith.constant 0 : index
      %c0_17 = arith.constant 0 : index
      %32 = vector.load %arg2[%c0_15, %c0_16, %c0_17] : memref<1x32x256xf32, #tpu.memory_space<vmem>>, vector<1x32x256xf32>
      %33 = vector.shape_cast %32 : vector<1x32x256xf32> to vector<32x256xf32>
      %c0_18 = arith.constant 0 : index
      %c0_19 = arith.constant 0 : index
      %34 = vector.load %arg3[%c0_18, %c0_19] : memref<40x32xf32, #tpu.memory_space<vmem>>, vector<40x32xf32>
      %cst_20 = arith.constant dense<0.000000e+00> : vector<40x256xf32>
      %35 = tpu.matmul %34, %33, %cst_20 {dimension_numbers = #tpu.dot_dimension_numbers<[1], [0], [0], [1], [0, 0, 1, 1], [], []>} : vector<40x32xf32>, vector<32x256xf32>, vector<40x256xf32> -> vector<40x256xf32>
      %c0_21 = arith.constant 0 : index
      %c0_22 = arith.constant 0 : index
      %36 = vector.load %arg4[%c0_21, %c0_22] : memref<40x1xf32, #tpu.memory_space<vmem>>, vector<40x1xf32>
      %37 = vector.broadcast %36 : vector<40x1xf32> to vector<40x256xf32>
      %38 = arith.addf %35, %37 : vector<40x256xf32>
      %39 = vector.extract_strided_slice %38 {offsets = [0, 0], sizes = [4, 256], strides = [1, 1]} : vector<40x256xf32> to vector<4x256xf32>
      %40 = arith.truncf %39 : vector<4x256xf32> to vector<4x256xbf16>
      %c0_23 = arith.constant 0 : index
      %c0_24 = arith.constant 0 : index
      %41 = vector.load %arg7[%c0_23, %c0_24] : memref<4x256xbf16, #tpu.memory_space<vmem>>, vector<4x256xbf16>
      tpu.vector_store %arg7[%c0_23, %c0_24], %40 {strides = array<i32>} : memref<4x256xbf16, #tpu.memory_space<vmem>>, vector<4x256xbf16>,
      %42 = vector.extract_strided_slice %38 {offsets = [4, 0], sizes = [4, 256], strides = [1, 1]} : vector<40x256xf32> to vector<4x256xf32>
      %43 = arith.truncf %42 : vector<4x256xf32> to vector<4x256xbf16>
      %c0_25 = arith.constant 0 : index
      %c0_26 = arith.constant 0 : index
      %44 = vector.load %arg8[%c0_25, %c0_26] : memref<4x256xbf16, #tpu.memory_space<vmem>>, vector<4x256xbf16>
      tpu.vector_store %arg8[%c0_25, %c0_26], %43 {strides = array<i32>} : memref<4x256xbf16, #tpu.memory_space<vmem>>, vector<4x256xbf16>,
      %45 = vector.extract_strided_slice %38 {offsets = [8, 0], sizes = [32, 256], strides = [1, 1]} : vector<40x256xf32> to vector<32x256xf32>
      %46 = arith.truncf %45 : vector<32x256xf32> to vector<32x256xbf16>
      %c0_27 = arith.constant 0 : index
      %c0_28 = arith.constant 0 : index
      %47 = vector.load %arg9[%c0_27, %c0_28] : memref<32x256xbf16, #tpu.memory_space<vmem>>, vector<32x256xbf16>
      tpu.vector_store %arg9[%c0_27, %c0_28], %46 {strides = array<i32>} : memref<32x256xbf16, #tpu.memory_space<vmem>>, vector<32x256xbf16>,
    } else {
    }
    %c128_i32 = arith.constant 128 : i32
    %3 = arith.muli %arg1, %c128_i32 : i32
    %4 = tpu.assume_multiple %3, 128 : i32
    %c0 = arith.constant 0 : index
    %5 = arith.index_cast %4 : i32 to index
    %6 = vector.load %arg7[%c0, %5] : memref<4x256xbf16, #tpu.memory_space<vmem>>, vector<4x128xbf16>
    %c0_1 = arith.constant 0 : index
    %c0_2 = arith.constant 0 : index
    %7 = vector.load %arg8[%c0_1, %c0_2] : memref<4x256xbf16, #tpu.memory_space<vmem>>, vector<4x256xbf16>
    %cst = arith.constant dense<0.000000e+00> : vector<256x128xf32>
    %8 = tpu.matmul %7, %6, %cst {dimension_numbers = #tpu.dot_dimension_numbers<[0], [0], [1], [1], [0, 1, 1, 1], [], []>} : vector<4x256xbf16>, vector<4x128xbf16>, vector<256x128xf32> -> vector<256x128xf32>
    %cst_3 = arith.constant dense<0xFF800000> : vector<128xf32>
    %9 = vector.multi_reduction <maximumf>, %8, %cst_3 [0] : vector<256x128xf32> to vector<128xf32>
    %10 = vector.shape_cast %9 : vector<128xf32> to vector<1x128xf32>
    %11 = vector.broadcast %10 : vector<1x128xf32> to vector<256x128xf32>
    %12 = arith.subf %8, %11 : vector<256x128xf32>
    %13 = math.exp %12 : vector<256x128xf32>
    %cst_4 = arith.constant dense<0.000000e+00> : vector<128xf32>
    %14 = vector.multi_reduction <add>, %13, %cst_4 [0] : vector<256x128xf32> to vector<128xf32>
    %15 = vector.shape_cast %14 : vector<128xf32> to vector<1x128xf32>
    %c0_5 = arith.constant 0 : index
    %c0_6 = arith.constant 0 : index
    %16 = vector.load %arg9[%c0_5, %c0_6] : memref<32x256xbf16, #tpu.memory_space<vmem>>, vector<32x256xbf16>
    %17 = arith.truncf %13 : vector<256x128xf32> to vector<256x128xbf16>
    %cst_7 = arith.constant dense<0.000000e+00> : vector<32x128xf32>
    %18 = tpu.matmul %16, %17, %cst_7 {dimension_numbers = #tpu.dot_dimension_numbers<[1], [0], [0], [1], [0, 0, 1, 1], [], []>} : vector<32x256xbf16>, vector<256x128xbf16>, vector<32x128xf32> -> vector<32x128xf32>
    %19 = tpu.reciprocal %15 {approx = true} : vector<1x128xf32> -> vector<1x128xf32>
    %20 = vector.broadcast %19 : vector<1x128xf32> to vector<32x128xf32>
    %21 = arith.mulf %18, %20 : vector<32x128xf32>
    %c0_8 = arith.constant 0 : index
    %c0_9 = arith.constant 0 : index
    %22 = memref.load %arg5[%c0_8, %c0_9] : memref<1x1xf32, #tpu.memory_space<smem>>
    %c0_10 = arith.constant 0 : index
    %c0_11 = arith.constant 0 : index
    %23 = arith.index_cast %4 : i32 to index
    %24 = vector.load %arg2[%c0_10, %c0_11, %23] : memref<1x32x256xf32, #tpu.memory_space<vmem>>, vector<1x32x128xf32>
    %25 = vector.shape_cast %24 : vector<1x32x128xf32> to vector<32x128xf32>
    %26 = vector.broadcast %22 : f32 to vector<32x128xf32>
    %27 = arith.mulf %26, %21 : vector<32x128xf32>
    %28 = arith.addf %27, %25 : vector<32x128xf32>
    %c0_12 = arith.constant 0 : index
    %c0_13 = arith.constant 0 : index
    %c0_14 = arith.constant 0 : index
    %29 = vector.load %arg6[%c0_12, %c0_13, %c0_14] : memref<1x32x128xf32, #tpu.memory_space<vmem>>, vector<1x32x128xf32>
    %30 = vector.shape_cast %29 : vector<1x32x128xf32> to vector<32x128xf32>
    %31 = vector.shape_cast %28 : vector<32x128xf32> to vector<1x32x128xf32>
    tpu.vector_store %arg6[%c0_12, %c0_13, %c0_14], %31 {strides = array<i32>} : memref<1x32x128xf32, #tpu.memory_space<vmem>>, vector<1x32x128xf32>,
    return
  }
  func.func @transform_0(%arg0: i32, %arg1: i32) -> (i32, i32, i32) {
    %c0_i32 = arith.constant 0 : i32
    %c0_i32_0 = arith.constant 0 : i32
    %c0_i32_1 = arith.constant 0 : i32
    return %arg0, %c0_i32, %c0_i32_0 : i32, i32, i32
  }
  func.func @transform_1(%arg0: i32, %arg1: i32) -> (i32, i32) {
    %c0_i32 = arith.constant 0 : i32
    %c0_i32_0 = arith.constant 0 : i32
    %c0_i32_1 = arith.constant 0 : i32
    return %c0_i32, %c0_i32_0 : i32, i32
  }
  func.func @transform_2(%arg0: i32, %arg1: i32) -> (i32, i32) {
    %c0_i32 = arith.constant 0 : i32
    %c0_i32_0 = arith.constant 0 : i32
    %c0_i32_1 = arith.constant 0 : i32
    return %c0_i32, %c0_i32_0 : i32, i32
  }
  func.func @transform_3(%arg0: i32, %arg1: i32) -> (i32, i32) {
    %c0_i32 = arith.constant 0 : i32
    %c0_i32_0 = arith.constant 0 : i32
    %c0_i32_1 = arith.constant 0 : i32
    return %c0_i32, %c0_i32_0 : i32, i32
  }
  func.func @transform_4(%arg0: i32, %arg1: i32) -> (i32, i32, i32) {
    %c0_i32 = arith.constant 0 : i32
    %c0_i32_0 = arith.constant 0 : i32
    return %arg0, %c0_i32, %arg1 : i32, i32, i32
  }
}

</mosaic_0001>

<bundles_post_ra>
// kernel: tpu_custom_call.1
= control target key start
LH: loop header
LB: loop body
LE: loop exit
PB: predicated region body
PF: predicated region fallthrough
CT: control target
= control target key end

     0   :  { %s2142_s0 = inlined_call_operand.hbm [shape: f32[2,32,256], index: 0, kind: input, shape index: {}]   ;;  %s2143_s1 = inlined_call_operand.vmem [shape: f32[40,32], index: 1, kind: input, shape index: {}]   ;;  %s2144_s2 = inlined_call_operand.vmem [shape: f32[40,1], index: 2, kind: input, shape index: {}]   ;;  %s2145_s3 = inlined_call_operand.<no memory space> [shape: f32[1,1], index: 3, kind: input, shape index: {}]   ;;  %s2146_s4 = inlined_call_operand.hbm [shape: f32[2,32,256], index: 4, kind: output, shape index: {}]  }
   0x1   :  { %9 = sst [smem:[#allocation5]] %s2145_s3 }
   0x2   :  { %10 = vsyncpa [#allocation7], 0 }
   0x3   :  { %12 = vsyncpa [#allocation7 + $0x1], 0 }
   0x4   :  { %13 = vsyncpa [#allocation8], 0 }
   0x5   :  { %15 = vsyncpa [#allocation8 + $0x1], 0  ;;  %s1555_s17 = smov 0   ;;  %s1557_s18 = smov 0  }
   0x6   :  { %s1559_s19 = smov 0   ;;  %s1561_s20 = smov 0  }
   0x7   :  { %s1563_s21 = smov 0   ;;  %s1565_s22 = smov 0  }
   0x8   :  { %s1567_s23 = smov 0   ;;  %s1569_s24 = smov 0  }
   0x9   :  { %s1571_s3 = smov 0   ;;  %s1573_s25 = smov 0  }
   0xa   :  { %s1575_s26 = smov 0  }
   0xb LB: > { %s1048_s27 = sadd.s32 4294967295, %s1515_s26   ;;  %s1049_s28 = sadd.s32 4294967294, %s1515_s26   ;;  %s1515_s26 = sphi %s1575_s26, %s21_s26   ;;  %s1511_s25 = sphi %s1573_s25, %s2168_s25   ;;  %s1507_s3 = sphi %s1571_s3, %s2167_s3   ;;  %s1503_s24 = sphi %s1569_s24, %s2166_s24   ;;  %s1499_s23 = sphi %s1567_s23, %s2165_s23   ;;  %s1495_s22 = sphi %s1565_s22, %s2164_s22   ;;  %s1491_s21 = sphi %s1563_s21, %s2163_s21   ;;  %s1487_s20 = sphi %s1561_s20, %s2162_s20   ;;  %s1483_s19 = sphi %s1559_s19, %s2161_s19   ;;  %s1479_s18 = sphi %s1557_s18, %s2160_s18   ;;  %s1475_s17 = sphi %s1555_s17, %s2159_s17  }
   0xc   : > { %s30_s29 = sadd.s32 1, %s1507_s3  ;;  %s33_s30 = sadd.s32 1, %s1511_s25 }
   0xd   : > { %p31_p0 = scmp.ge.s32.totalorder %s30_s29, 2  ;;  %s40_s5 = sadd.s32 1, %s1495_s22 }
   0xe   : > { %p47_p1 = scmp.ne.s32.totalorder %s1495_s22, %s1491_s21  ;;  %p48_p2 = scmp.eq.s32.totalorder %s1515_s26, 0 }
   0xf   : > { %s2170_s29 = smov (%p31_p0, %s30_s29), 0  ;;  %s2172_s30 = smov (!%p31_p0, %s33_s30), %s1511_s25 }
  0x10   : > { %p1619_p3 = por %p48_p2, %p47_p1  ;;  %p53_p4 = scmp.ne.s32.totalorder %s1491_s21, %s1487_s20 }
  0x11   : > { %p35_p5 = scmp.ge.s32.totalorder %s2172_s30, 2  ;;  %p54_p6 = scmp.eq.s32.totalorder %s1048_s27, 0 }
  0x12   : > { %s127_s7 = ssub.s32 %s1507_s3, %s2170_s29  ;;  %s131_s8 = sadd.s32 1, %s1483_s19 }
  0x13   : > { %s2174_s30 = smov (%p35_p5, %s2172_s30), 0  ;;  %p1629_p7 = por %p54_p6, %p53_p4 }
  0x14   : > { %2150 = sst [smem:[#allocation12_spill]] %s2174_s30  ;;  %p141_p8 = scmp.ne.s32.totalorder %s1483_s19, %s1479_s18 }
  0x15   : > { %s37_s10 = ssub.s32 %s1511_s25, %s2174_s30  ;;  %p142_p9 = scmp.eq.s32.totalorder %s1048_s27, 3 }
  0x16   : > { %p38_p10 = scmp.eq.s32.totalorder %s37_s10, 0  ;;  %s128_s11 = sor.u32 %s127_s7, %s37_s10 }
  0x17   : > { %p129_p11 = scmp.eq.s32.totalorder %s128_s11, 0  ;;  %p1637_p12 = por %p142_p9, %p141_p8 }
  0x18   : > { %s1642_s13 = scalar_select %p38_p10, %s1495_s22, %s40_s5  }
  0x19   : > { %s2152_s12 = scalar_select %p1637_p12, 1, 0 }
  0x1a   : > { %s1645_s14 = scalar_select %p129_p11, %s1483_s19, %s131_s8  }
  0x1b   : > { %p147_p13 = scmp.ne.s32.totalorder %s1479_s18, %s1475_s17  ;;  %p148_p0 = scmp.eq.s32.totalorder %s1049_s28, 3 }
  0x1c   : > { %p1196_p1 = scmp.lt.s32.totalorder %s1515_s26, 4  ;;  %s177_s16 = sand.u32 1, %s1495_s22  }
  0x1d   : > { %p1650_p2 = por %p148_p0, %p147_p13  ;;  %s1052_s20 = sshll.u32 %s177_s16, 6 }
  0x1e   : > { %s1091_s27 = sshll.u32 %s1511_s25, 10  ;;  %s181_s5 = scalar_lea.vmem [#allocation6], %s1052_s20 }
  0x1f   : > { %s2153_s15 = scalar_select %p1650_p2, 1, 0 }
  0x20   : > { %s1659_s11 = scalar_lea.hbm %s2142_s0, %s1091_s27  ;;  %s188_s8 = sshll.u32 %s181_s5, 4  ;;  %s1661_s8 = int_to_ptr.vmem [resolvable:$true] %s188_s8 }
  0x21   : > { %p1665_p4 = pnand %p1196_p1, %p1619_p3  ;;  %s1670_s30 = scalar_lea.sflag [#allocation7], %s177_s16 }
  0x22   : > { %s1363_s27 = scalar_lea.hbm %s1659_s11, 1024  ;;  %s1368_s6 = scalar_lea.hbm %s2142_s0, 2048 }
  0x23   : > { %p1364_p6 = scmp.ne.s32.totalorder %s1659_s11, %s1363_s27  ;;  %p1365_p8 = pneg %p1665_p4 }
  0x24   : > { %p1369_p3 = scmp.lt.u32.totalorder %s1659_s11, %s2142_s0  ;;  %p1370_p11 = scmp.lt.u32.totalorder %s1368_s6, %s1363_s27 }
  0x25   : > { %p1366_p9 = pnand %p1365_p8, %p1364_p6  ;;  %p1372_p0 = scmp.lt.u32.totalorder %s1363_s27, %s1659_s11 }
  0x26   : > { %p1371_p13 = por %p1370_p11, %p1369_p3 }
  0x27   : > { %p1367_p10 = pneg %p1366_p9 }
  0x28   : > { %p1373_p1 = por %p1372_p0, %p1371_p13 }
  0x2a   : > { %p1374_p5 = pnand %p1373_p1, %p1367_p10 }
  0x2c   : > { %1377 = shalt.err (!%p1374_p5)
}
  0x2d   : > { %s1378_s16 = scalar_lea.vmem %s1661_s8, 1024  ;;  %s1517_s20 = smov [#allocation6]  }
  0x2e   : > { %p1379_p6 = scmp.ne.s32.totalorder %s1661_s8, %s1378_s16  ;;  %s1383_s7 = sshll.u32 %s1517_s20, 4  ;;  %s1384_s7 = int_to_ptr.vmem [resolvable:$false] %s1383_s7 }
  0x2f   : > { %s1385_s10 = scalar_lea.vmem %s1384_s7, 2048  ;;  %p1386_p12 = scmp.lt.s32.totalorder %s1661_s8, %s1384_s7 }
  0x30   : > { %p1381_p9 = pnand %p1379_p6, %p1365_p8  ;;  %p1387_p3 = scmp.lt.s32.totalorder %s1385_s10, %s1378_s16 }
  0x32   : > { %p1382_p2 = pneg %p1381_p9  ;;  %p1388_p11 = por %p1387_p3, %p1386_p12 }
  0x34   : > { %p1389_p13 = pnand %p1388_p11, %p1382_p2 }
  0x36   : > { %1392 = shalt.err (!%p1389_p13)
}
  0x37   : > { %s1518_s27 = smov 256   ;;  %s1519_s6 = smov 16  }
  0x38   : > { %1191 = dma.hbm_to_vmem [thread:$0]  (!%p1665_p4), %s1659_s11, 1024, %s1661_s8, %s1670_s30, %s1518_s27, %s1518_s27, %s1519_s6  }
  0x39   : > { %p196_p5 = scmp.lt.s32.totalorder %s1515_s26, 5  ;;  %p2155_p8 = scmp.ge.s32.totalorder %s1515_s26, 1 }
  0x3b   : > { %p197_p10 = pnand %p2155_p8, %p196_p5 }
  0x3c   : > { %s202_s5 = sand.u32 (!%p197_p10), 1, %s1491_s21  }
  0x3d   : > { %200 = sbr.rel (%p197_p10) target bundleno = 1025 (0x401), region = 36  ;;  %s1056_s16 = sshll.u32 (!%p197_p10), %s202_s5, 6 }
  0x3e   : > { %s203_s20 = scalar_lea.sflag (!%p197_p10), [#allocation7], %s202_s5  ;;  %s1702_s7 = scalar_lea.vmem (!%p197_p10), [#allocation6], %s1056_s16 }
  0x44   : > { %1466 = dma.done.wait (%p1629_p7), %s203_s20, 1024  }
  0x45   : > { %1468 = vsyncadd (%p1629_p7), %s203_s20, 4294966272  ;;  %s228_s28 = sand.u32 1, %s1479_s18   ;;  %p1058_p12 = scmp.ne.s32.totalorder %s1499_s23, 0 }
  0x46   : > { %s1057_s30 = sshll.u32 %s228_s28, 5  ;;  %v237_v0 = vld [vmem:[%s1702_s7 + $0x8] sm:$0xff] (!%p1058_p12)  ;;  %v239_v1 = vld [vmem:[%s1702_s7 + $0x18] sm:$0xff] (!%p1058_p12)  ;;  %v236_v2 = vld [vmem:[%s1702_s7] sm:$0xff] (!%p1058_p12)  ;;  %v1520_v7 = vmov (!%p1058_p12), 0.0   ;;  %v1521_v12 = vmov (!%p1058_p12), 0   ;;  %v398_v28 = vlaneseq (!%p1058_p12) }
  0x47   : > { %s1711_s11 = scalar_lea.vmem [#allocation9], %s1057_s30  ;;  %235 = sbr.rel (%p1058_p12) target bundleno = 307 (0x133), region = 44  ;;  %v1171_v3 = vpack.c.bf16 (!%p1058_p12), %v239_v1, %v237_v0  ;;  %v238_v4 = vld [vmem:[%s1702_s7 + $0x10] sm:$0xff] (!%p1058_p12)  ;;  %v241_v5 = vld [vmem:[%s1702_s7 + $0x28] sm:$0xff] (!%p1058_p12)  ;;  %v243_v6 = vld [vmem:[%s1702_s7 + $0x38] sm:$0xff] (!%p1058_p12)  ;;  %359 = vmatprep.mubr.f32.mxu0 (!%p1058_p12), %v1520_v7  ;;  %377 = vmatprep.mubr.f32.mxu1 (!%p1058_p12), %v1520_v7  ;;  %vm279_vm0 = vcmask (!%p1058_p12), 261120  }
  0x48   : > { %v1173_v8 = vpack.c.bf16 (!%p1058_p12), %v238_v4, %v236_v2  ;;  %v1175_v9 = vpack.c.bf16 (!%p1058_p12), %v243_v6, %v241_v5  ;;  %v240_v10 = vld [vmem:[%s1702_s7 + $0x20] sm:$0xff] (!%p1058_p12)  ;;  %v242_v11 = vld [vmem:[%s1702_s7 + $0x30] sm:$0xff] (!%p1058_p12)  ;;  %1295 = vset.pattern.permute.xlu0 (!%p1058_p12), %v1521_v12  ;;  %1296 = vset.pattern.permute.xlu1 (!%p1058_p12), %v1521_v12  ;;  %v249_v14 = vld [vmem:[%s2144_s2] sm:$0xff] (!%p1058_p12)  ;;  %v1522_v26 = vmov (!%p1058_p12), 1983009808   ;;  %v399_v31 = vshrl.u32 (!%p1058_p12), %v398_v28, 7 }
  0x49   : > { %1172 = vmatprep.subr.bf16.mxu0 (!%p1058_p12), %v1171_v3  ;;  %1179 = vmatprep.subr.bf16.mxu1 (!%p1058_p12), %v1171_v3  ;;  %v1177_v13 = vpack.c.bf16 (!%p1058_p12), %v242_v11, %v240_v10  ;;  %v251_v15 = vld [vmem:[%s2144_s2 + $0x10] sm:$0xff] (!%p1058_p12)  ;;  %v250_v16 = vld [vmem:[%s2144_s2 + $0x8] sm:$0xff] (!%p1058_p12)  ;;  %v252_v17 = vld [vmem:[%s2144_s2 + $0x18] sm:$0xff] (!%p1058_p12)  ;;  %v396_v27 = vunpack.c.l.s4 (!%p1058_p12), %v1522_v26 }
  0x4a   : > { %1174 = vmatpush1.bf16.msra.mxu0 (!%p1058_p12), %v1173_v8  ;;  %1181 = vmatpush1.bf16.msra.mxu1 (!%p1058_p12), %v1173_v8  ;;  %v244_v18 = vld [vmem:[%s2143_s1] sm:$0xff] (!%p1058_p12)  ;;  %v247_v19 = vld [vmem:[%s2143_s1 + $0x18] sm:$0xff] (!%p1058_p12)  ;;  %v245_v21 = vld [vmem:[%s2143_s1 + $0x8] sm:$0xff] (!%p1058_p12) }
  0x4b   : > { %1176 = vmatprep.subr.bf16.mxu0 (!%p1058_p12), %v1175_v9  ;;  %1180 = vmatprep.subr.bf16.mxu1 (!%p1058_p12), %v1175_v9  ;;  %v253_v20 = vld [vmem:[%s2144_s2 + $0x20] sm:$0xff] (!%p1058_p12)  ;;  %v246_v23 = vld [vmem:[%s2143_s1 + $0x10] sm:$0xff] (!%p1058_p12)  ;;  %v397_v30 = vunpack.c.0.s8 (!%p1058_p12), %v396_v27 }
  0x4c   : > { %256 = vperm.xlu0 (!%p1058_p12), %1295, %v249_v14   ;;  %266 = vperm.xlu1 (!%p1058_p12), %1296, %v251_v15   ;;  %v248_v22 = vld [vmem:[%s2143_s1 + $0x20] sm:$0xff] (!%p1058_p12) }
  0x4d   : > { %v400_v39 = vsub.s32 (!%p1058_p12), %v397_v30, %v399_v31 }
  0x4e   : > { %1178 = vmatpush1.bf16.msra.mxu0 %v1177_v13  ;;  %1182 = vmatpush1.bf16.msra.mxu1 %v1177_v13 }
  0x50   : > { %261 = vperm.xlu0 %1295, %v250_v16   ;;  %271 = vperm.xlu1 %1296, %v252_v17  }
  0x51   : > { %1059 = vmatmul.mubr.msk.f32.vlgmr.msra.gmra.mrb[0].mxu0 %vm279_vm0, %v244_v18  ;;  %1062 = vmatmul.mubr.msk.f32.vlgmr.msra.gmra.mrb[0].mxu1 %vm279_vm0, %v247_v19 }
  0x52   : > { %365 = vmatprep.mubr.f32.mxu0 %v1520_v7  ;;  %383 = vmatprep.mubr.f32.mxu1 %v1520_v7 }
  0x54   : > { %276 = vperm.xlu0 %1295, %v253_v20  }
  0x55   : > { %1060 = vmatmul.mubr.msk.f32.gmra.mrb[2].mxu0 %vm279_vm0, %v245_v21  ;;  %1063 = vmatmul.mubr.msk.f32.gmra.mrb[2].mxu1 %vm279_vm0, %v248_v22 }
  0x56   : > { %371 = vmatprep.mubr.f32.mxu0 %v1520_v7 }
  0x59   : > { %1061 = vmatmul.mubr.msk.f32.gmra.mrb[4].mxu0 %vm279_vm0, %v246_v23 }
  0xcb   : > { %v257_v24 = vpop.permute.xlu0 %256  ;;  %v267_v25 = vpop.permute.xlu1 %266 }
  0xcf   : > { %v262_v29 = vpop.permute.xlu0 %261  ;;  %v272_v32 = vpop.permute.xlu1 %271 }
  0xd3   : > { %v277_v40 = vpop.permute.xlu0 %276 }
 0x124   : > { %v361_v33 = vpop.f32.mrb[0].mxu0  ;;  %v379_v34 = vpop.f32.mrb[0].mxu1 }
 0x125   : > { %v362_v35 = vadd.f32 %v361_v33, %v257_v24  ;;  %v363_v36 = vpop.f32.mrb[1].mxu0  ;;  %v381_v37 = vpop.f32.mrb[1].mxu1  ;;  %v380_v41 = vadd.f32 %v379_v34, %v272_v32 }
 0x126   : > { %v364_v38 = vadd.f32 %v363_v36, %v257_v24  ;;  %v382_v43 = vadd.f32 %v381_v37, %v272_v32 }
 0x128   : > { %v1064_v42 = vpack.c.bf16 %v364_v38, %v362_v35  ;;  %v367_v44 = vpop.f32.mrb[2].mxu0  ;;  %v385_v45 = vpop.f32.mrb[2].mxu1 }
 0x129   : > { %v386_v46 = vadd.f32 %v385_v45, %v277_v40  ;;  %v369_v47 = vpop.f32.mrb[3].mxu0  ;;  %v387_v48 = vpop.f32.mrb[3].mxu1  ;;  %v368_v55 = vadd.f32 %v367_v44, %v262_v29 }
 0x12a   : > { %v401_v49 = vrot.slane %v1064_v42, %v400_v39  ;;  %1065 = vst.sshfl [vmem:[#allocation2] sm:$0x33 pattern:$0x76325410] %v1064_v42  ;;  %v388_v50 = vadd.f32 %v387_v48, %v277_v40  ;;  %v370_v58 = vadd.f32 %v369_v47, %v262_v29 }
 0x12b   : > { %v409_v51 = vpack.c.bf16 %v386_v46, %v380_v41 }
 0x12c   : > { %v404_v52 = vcombine.high %v401_v49, %v401_v49  ;;  %v410_v53 = vpack.c.bf16 %v388_v50, %v382_v43  ;;  %v373_v54 = vpop.f32.mrb[4].mxu0 }
 0x12d   : > { %413 = vst [vmem:[#allocation4 + $0x10] sm:$0xff] %v409_v51  ;;  %v374_v56 = vadd.f32 %v373_v54, %v267_v25  ;;  %v375_v57 = vpop.f32.mrb[5].mxu0 }
 0x12e   : > { %406 = vst [vmem:[#allocation3] sm:$0xf] %v404_v52  ;;  %414 = vst [vmem:[#allocation4 + $0x18] sm:$0xff] %v410_v53  ;;  %v376_v59 = vadd.f32 %v375_v57, %v267_v25 }
 0x12f   : > { %v407_v60 = vpack.c.bf16 %v374_v56, %v368_v55 }
 0x130   : > { %v408_v61 = vpack.c.bf16 %v376_v59, %v370_v58 }
 0x131   : > { %411 = vst [vmem:[#allocation4] sm:$0xff] %v407_v60 }
 0x132   : > { %412 = vst [vmem:[#allocation4 + $0x8] sm:$0xff] %v408_v61 }
 0x133 PF: > { %s1066_s10 = sshll.u32 %s1499_s23, 7  ;;  %vm514_vm1 = vcmask 1041408   ;;  %vm465_vm2 = vcmask 31744   ;;  %s923_s16 = sld [smem:[#allocation5]] }
 0x134   : > { %s1758_s27 = sshra.s32 %s1066_s10, 7  ;;  %s958_s8 = sshll.u32 %s1711_s11, 4  ;;  %s2070_s8 = int_to_ptr.vmem [resolvable:$true] %s958_s8 }
 0x135   : > { %v1068_v62 = vld.sshfl [vmem:[#allocation3] sm:$0x33 pattern:$0x76325410]  ;;  %s1067_s6 = sshll.u32 %s1758_s27, 1  ;;  %s1085_s20 = sshll.u32 %s1758_s27, 3 }
 0x136   : > { %433 = vxpose.xlu0.c.b16.start.end [1/1] (short) %v1068_v62, 128  ;;  %s419_s5 = scalar_lea.vmem [#allocation2], %s1067_s6  ;;  %v430_v1 = vcombine.high %v1068_v62, %v1068_v62  ;;  %s2059_s30 = scalar_lea.vmem %s1702_s7, %s1085_s20 [#allocation6] }
 0x137   : > { %v420_v63 = vld [vmem:[%s419_s5] sm:$0x3]  ;;  %s1087_s7 = sshll.u32 %s1503_s24, 3  ;;  %s2081_s6 = scalar_lea.sflag [#allocation8], %s228_s28 }
 0x138   : > { %1183 = vmatprep.subr.msk.bf16.mxu0 %vm514_vm1, %v420_v63  ;;  %v516_v0 = vsel %vm514_vm1, %v420_v63, 0  ;;  %s955_s9 = sadd.s32 %s1499_s23, %s1087_s7  ;;  %s1393_s5 = scalar_lea.vmem %s2070_s8, 512 }
 0x139   : > { %1138 = vmatpush3.bf16.msra.mxu0 %v516_v0  ;;  %v850_v51 = vld [vmem:[#allocation4 + $0x8] sm:$0xff]  ;;  %s1088_s24 = sshll.u32 %s955_s9, 7  ;;  %p1394_p7 = scmp.ne.s32.totalorder %s2070_s8, %s1393_s5 }
 0x13a   : > { %901 = vmatprep.mubr.bf16.mxu1 %v850_v51  ;;  %s2075_s23 = scalar_lea.hbm %s2146_s4, %s1088_s24  ;;  %p2156_p2 = scmp.ne.s32.totalorder %s2152_s12, 0 }
 0x13c   : > { %p1395_p4 = pnand %p1394_p7, %p2156_p2 }
 0x13e   : > { %p1396_p0 = pneg %p1395_p4 }
 0x153   : > { %449 = vxpose.xlu0.c.b16.start.end [1/1] (short) %v430_v1, 128 }
 0x19c   : > { %v441_v2 = vpop.trf.xlu0 }
 0x19d   : > { %1139 = vmatprep.mubr.msk.bf16.mxu0 %vm465_vm2, %v441_v2 }
 0x1a0   : > { %v442_v3 = vpop.trf.xlu0 }
 0x1a1   : > { %1140 = vmatmul.mubr.msk.bf16.vlgmr.msra.gmra.mrb[0].mxu0 %vm465_vm2, %v442_v3 }
 0x1a4   : > { %v443_v4 = vpop.trf.xlu0 }
 0x1a5   : > { %1143 = vmatprep.mubr.msk.bf16.mxu0 %vm465_vm2, %v443_v4 }
 0x1a8   : > { %v444_v5 = vpop.trf.xlu0 }
 0x1a9   : > { %1144 = vmatmul.mubr.msk.bf16.gmra.mrb[4].mxu0 %vm465_vm2, %v444_v5 }
 0x1ac   : > { %v445_v6 = vpop.trf.xlu0 }
 0x1ad   : > { %1147 = vmatprep.mubr.msk.bf16.mxu0 %vm465_vm2, %v445_v6 }
 0x1b0   : > { %v446_v7 = vpop.trf.xlu0 }
 0x1b1   : > { %1148 = vmatmul.mubr.msk.bf16.gmra.mrb[8].mxu0 %vm465_vm2, %v446_v7 }
 0x1b4   : > { %v447_v8 = vpop.trf.xlu0 }
 0x1b5   : > { %1151 = vmatprep.mubr.msk.bf16.mxu0 %vm465_vm2, %v447_v8 }
 0x1b8   : > { %v448_v9 = vpop.trf.xlu0 }
 0x1b9   : > { %1152 = vmatmul.mubr.msk.bf16.gmra.mrb[12].mxu0 %vm465_vm2, %v448_v9 }
 0x1bc   : > { %v457_v10 = vpop.trf.xlu0 }
 0x1bd   : > { %1155 = vmatprep.mubr.msk.bf16.mxu0 %vm465_vm2, %v457_v10 }
 0x1c0   : > { %v458_v11 = vpop.trf.xlu0 }
 0x1c1   : > { %1156 = vmatmul.mubr.msk.bf16.gmra.mrb[16].mxu0 %vm465_vm2, %v458_v11 }
 0x1c4   : > { %v459_v12 = vpop.trf.xlu0 }
 0x1c5   : > { %1159 = vmatprep.mubr.msk.bf16.mxu0 %vm465_vm2, %v459_v12 }
 0x1c8   : > { %v460_v13 = vpop.trf.xlu0 }
 0x1c9   : > { %1160 = vmatmul.mubr.msk.bf16.gmra.mrb[20].mxu0 %vm465_vm2, %v460_v13 }
 0x1cc   : > { %v461_v14 = vpop.trf.xlu0 }
 0x1cd   : > { %1163 = vmatprep.mubr.msk.bf16.mxu0 %vm465_vm2, %v461_v14 }
 0x1d0   : > { %v462_v15 = vpop.trf.xlu0 }
 0x1d1   : > { %1164 = vmatmul.mubr.msk.bf16.gmra.mrb[24].mxu0 %vm465_vm2, %v462_v15 }
 0x1d4   : > { %v463_v16 = vpop.trf.xlu0 }
 0x1d5   : > { %1167 = vmatprep.mubr.msk.bf16.mxu0 %vm465_vm2, %v463_v16 }
 0x1d8   : > { %v464_v17 = vpop.trf.xlu0 }
 0x1d9   : > { %1168 = vmatmul.mubr.msk.bf16.gmra.mrb[28].mxu0 %vm465_vm2, %v464_v17 }
 0x274   : > { %v1777_v18 = vpop.f32.mrb[0].mxu0 }
 0x275   : > { %v1779_v19 = vpop.f32.mrb[1].mxu0 }
 0x276   : > { %v1781_v20 = vpop.f32.mrb[2].mxu0 }
 0x277   : > { %v1783_v21 = vpop.f32.mrb[3].mxu0 }
 0x27c   : > { %v1785_v22 = vpop.f32.mrb[4].mxu0 }
 0x27d   : > { %v681_v23 = vmax.f32 %v1777_v18, %v1785_v22  ;;  %v1789_v24 = vpop.f32.mrb[5].mxu0 }
 0x27e   : > { %v679_v25 = vmax.f32 %v1779_v19, %v1789_v24  ;;  %v1793_v26 = vpop.f32.mrb[6].mxu0 }
 0x27f   : > { %v682_v27 = vmax.f32 %v1781_v20, %v1793_v26  ;;  %v1797_v28 = vpop.f32.mrb[7].mxu0 }
 0x280   : > { %v680_v29 = vmax.f32 %v1783_v21, %v1797_v28 }
 0x284   : > { %v1801_v30 = vpop.f32.mrb[8].mxu0 }
 0x285   : > { %v685_v31 = vmax.f32 %v681_v23, %v1801_v30  ;;  %v1804_v32 = vpop.f32.mrb[9].mxu0 }
 0x286   : > { %v683_v33 = vmax.f32 %v679_v25, %v1804_v32  ;;  %v1807_v34 = vpop.f32.mrb[10].mxu0 }
 0x287   : > { %v686_v35 = vmax.f32 %v682_v27, %v1807_v34  ;;  %v1810_v36 = vpop.f32.mrb[11].mxu0 }
 0x288   : > { %v684_v37 = vmax.f32 %v680_v29, %v1810_v36 }
 0x28c   : > { %v1813_v38 = vpop.f32.mrb[12].mxu0 }
 0x28d   : > { %v689_v39 = vmax.f32 %v685_v31, %v1813_v38  ;;  %v1816_v40 = vpop.f32.mrb[13].mxu0 }
 0x28e   : > { %v687_v41 = vmax.f32 %v683_v33, %v1816_v40  ;;  %v1819_v42 = vpop.f32.mrb[14].mxu0 }
 0x28f   : > { %v690_v43 = vmax.f32 %v686_v35, %v1819_v42  ;;  %v1822_v44 = vpop.f32.mrb[15].mxu0 }
 0x290   : > { %v688_v45 = vmax.f32 %v684_v37, %v1822_v44 }
 0x294   : > { %v1825_v46 = vpop.f32.mrb[16].mxu0 }
 0x295   : > { %v693_v47 = vmax.f32 %v689_v39, %v1825_v46  ;;  %v1828_v48 = vpop.f32.mrb[17].mxu0 }
 0x296   : > { %v691_v49 = vmax.f32 %v687_v41, %v1828_v48  ;;  %v1831_v50 = vpop.f32.mrb[18].mxu0 }
 0x297   : > { %v694_v52 = vmax.f32 %v690_v43, %v1831_v50  ;;  %v1834_v53 = vpop.f32.mrb[19].mxu0 }
 0x298   : > { %v692_v54 = vmax.f32 %v688_v45, %v1834_v53 }
 0x29c   : > { %v1837_v55 = vpop.f32.mrb[20].mxu0 }
 0x29d   : > { %v697_v56 = vmax.f32 %v693_v47, %v1837_v55  ;;  %v1840_v57 = vpop.f32.mrb[21].mxu0 }
 0x29e   : > { %v695_v58 = vmax.f32 %v691_v49, %v1840_v57  ;;  %v1843_v59 = vpop.f32.mrb[22].mxu0 }
 0x29f   : > { %v698_v60 = vmax.f32 %v694_v52, %v1843_v59  ;;  %v1846_v61 = vpop.f32.mrb[23].mxu0 }
 0x2a0   : > { %v696_v62 = vmax.f32 %v692_v54, %v1846_v61 }
 0x2a4   : > { %v1849_v63 = vpop.f32.mrb[24].mxu0 }
 0x2a5   : > { %v701_v0 = vmax.f32 %v697_v56, %v1849_v63  ;;  %v1852_v1 = vpop.f32.mrb[25].mxu0 }
 0x2a6   : > { %v699_v2 = vmax.f32 %v695_v58, %v1852_v1  ;;  %v1855_v3 = vpop.f32.mrb[26].mxu0 }
 0x2a7   : > { %v702_v4 = vmax.f32 %v698_v60, %v1855_v3  ;;  %v1858_v5 = vpop.f32.mrb[27].mxu0 }
 0x2a8   : > { %v700_v6 = vmax.f32 %v696_v62, %v1858_v5 }
 0x2ac   : > { %v1861_v7 = vpop.f32.mrb[28].mxu0 }
 0x2ad   : > { %v705_v8 = vmax.f32 %v701_v0, %v1861_v7  ;;  %v1864_v9 = vpop.f32.mrb[29].mxu0 }
 0x2ae   : > { %v703_v10 = vmax.f32 %v699_v2, %v1864_v9  ;;  %v1867_v11 = vpop.f32.mrb[30].mxu0 }
 0x2af   : > { %v706_v12 = vmax.f32 %v702_v4, %v1867_v11  ;;  %v1870_v13 = vpop.f32.mrb[31].mxu0 }
 0x2b0   : > { %v704_v14 = vmax.f32 %v700_v6, %v1870_v13 }
 0x2b1   : > { %v708_v15 = vmax.f32 %v705_v8, %v706_v12 }
 0x2b2   : > { %v707_v16 = vmax.f32 %v703_v10, %v704_v14 }
 0x2b4   : > { %v709_v17 = vmax.f32 %v707_v16, %v708_v15 }
 0x2b6   : > { %v710_v23 = vrot.slane %v709_v17, 4 }
 0x2b8   : > { %v711_v25 = vmax.f32 %v709_v17, %v710_v23 }
 0x2ba   : > { %v712_v27 = vrot.slane %v711_v25, 2 }
 0x2bc   : > { %v713_v29 = vmax.f32 %v711_v25, %v712_v27 }
 0x2be   : > { %v714_v31 = vrot.slane %v713_v29, 1 }
 0x2c0   : > { %v1873_v33 = vmax.f32 %v713_v29, %v714_v31 }
 0x2c2   : > { %v716_v35 = vsub.f32 %v1779_v19, %v1873_v33  ;;  %v717_v37 = vsub.f32 %v1783_v21, %v1873_v33  ;;  %v718_v39 = vsub.f32 %v1777_v18, %v1873_v33  ;;  %v719_v41 = vsub.f32 %v1781_v20, %v1873_v33 }
 0x2c3   : > { %v720_v43 = vsub.f32 %v1789_v24, %v1873_v33  ;;  %v721_v45 = vsub.f32 %v1797_v28, %v1873_v33  ;;  %v722_v47 = vsub.f32 %v1785_v22, %v1873_v33  ;;  %v723_v19 = vsub.f32 %v1793_v26, %v1873_v33 }
 0x2c4   : > { %v724_v21 = vsub.f32 %v1804_v32, %v1873_v33  ;;  %v725_v18 = vsub.f32 %v1810_v36, %v1873_v33  ;;  %v726_v20 = vsub.f32 %v1801_v30, %v1873_v33  ;;  %v727_v24 = vsub.f32 %v1807_v34, %v1873_v33 }
 0x2c5   : > { %v728_v28 = vsub.f32 %v1816_v40, %v1873_v33  ;;  %v729_v22 = vsub.f32 %v1822_v44, %v1873_v33  ;;  %v730_v26 = vsub.f32 %v1813_v38, %v1873_v33  ;;  %v731_v32 = vsub.f32 %v1819_v42, %v1873_v33 }
 0x2c6   : > { %v732_v36 = vsub.f32 %v1828_v48, %v1873_v33  ;;  %v733_v30 = vsub.f32 %v1834_v53, %v1873_v33  ;;  %v734_v34 = vsub.f32 %v1825_v46, %v1873_v33  ;;  %v735_v40 = vsub.f32 %v1831_v50, %v1873_v33 }
 0x2c7   : > { %v736_v44 = vsub.f32 %v1840_v57, %v1873_v33  ;;  %v737_v38 = vsub.f32 %v1846_v61, %v1873_v33  ;;  %v738_v42 = vsub.f32 %v1837_v55, %v1873_v33  ;;  %v739_v48 = vsub.f32 %v1843_v59, %v1873_v33 }
 0x2c8   : > { %v740_v49 = vsub.f32 %v1852_v1, %v1873_v33  ;;  %v741_v46 = vsub.f32 %v1858_v5, %v1873_v33  ;;  %v742_v50 = vsub.f32 %v1849_v63, %v1873_v33  ;;  %v743_v51 = vsub.f32 %v1855_v3, %v1873_v33 }
 0x2c9   : > { %v744_v52 = vsub.f32 %v1864_v9, %v1873_v33  ;;  %v745_v53 = vsub.f32 %v1870_v13, %v1873_v33  ;;  %v746_v54 = vsub.f32 %v1861_v7, %v1873_v33  ;;  %v747_v56 = vsub.f32 %v1867_v11, %v1873_v33 }
 0x2ca   : > { %v748_v57 = vmul.f32 1.442695, %v716_v35  ;;  %v750_v58 = vmul.f32 1.442695, %v717_v37  ;;  %v752_v60 = vmul.f32 1.442695, %v718_v39 }
 0x2cb   : > { %v754_v62 = vmul.f32 1.442695, %v719_v41  ;;  %v756_v0 = vmul.f32 1.442695, %v720_v43  ;;  %v758_v2 = vmul.f32 1.442695, %v721_v45 }
 0x2cc   : > { %1297 = vpow2.f32 %v748_v57  ;;  %v760_v4 = vmul.f32 1.442695, %v722_v47  ;;  %v762_v6 = vmul.f32 1.442695, %v723_v19  ;;  %v764_v8 = vmul.f32 1.442695, %v724_v21 }
 0x2cd   : > { %1299 = vpow2.f32 %v750_v58  ;;  %v766_v10 = vmul.f32 1.442695, %v725_v18  ;;  %v768_v12 = vmul.f32 1.442695, %v726_v20  ;;  %v770_v14 = vmul.f32 1.442695, %v727_v24 }
 0x2ce   : > { %1301 = vpow2.f32 %v752_v60  ;;  %v772_v15 = vmul.f32 1.442695, %v728_v28  ;;  %v774_v16 = vmul.f32 1.442695, %v729_v22  ;;  %v776_v23 = vmul.f32 1.442695, %v730_v26 }
 0x2cf   : > { %1303 = vpow2.f32 %v754_v62  ;;  %v778_v27 = vmul.f32 1.442695, %v731_v32  ;;  %v780_v31 = vmul.f32 1.442695, %v732_v36  ;;  %v782_v41 = vmul.f32 1.442695, %v733_v30 }
 0x2d0   : > { %1305 = vpow2.f32 %v756_v0  ;;  %v784_v45 = vmul.f32 1.442695, %v734_v34  ;;  %v786_v18 = vmul.f32 1.442695, %v735_v40  ;;  %v788_v24 = vmul.f32 1.442695, %v736_v44 }
 0x2d1   : > { %1307 = vpow2.f32 %v758_v2  ;;  %v790_v32 = vmul.f32 1.442695, %v737_v38  ;;  %v792_v30 = vmul.f32 1.442695, %v738_v42  ;;  %v794_v61 = vmul.f32 1.442695, %v739_v48 }
 0x2d2   : > { %1309 = vpow2.f32 %v760_v4  ;;  %v796_v55 = vmul.f32 1.442695, %v740_v49  ;;  %v798_v59 = vmul.f32 1.442695, %v741_v46  ;;  %v800_v1 = vmul.f32 1.442695, %v742_v50 }
 0x2d3   : > { %1311 = vpow2.f32 %v762_v6  ;;  %v802_v5 = vmul.f32 1.442695, %v743_v51  ;;  %v804_v63 = vmul.f32 1.442695, %v744_v52  ;;  %v806_v3 = vmul.f32 1.442695, %v745_v53 }
 0x2d4   : > { %1313 = vpow2.f32 %v764_v8  ;;  %v808_v4 = vmul.f32 1.442695, %v746_v54  ;;  %v810_v8 = vmul.f32 1.442695, %v747_v56 }
 0x2d5   : > { %1315 = vpow2.f32 %v766_v10 }
 0x2d6   : > { %v1939_v17 = vpop.eup %1297  ;;  %1317 = vpow2.f32 %v768_v12 }
 0x2d7   : > { %v1941_v25 = vpop.eup %1299  ;;  %1319 = vpow2.f32 %v770_v14 }
 0x2d8   : > { %v1943_v29 = vpop.eup %1301  ;;  %1321 = vpow2.f32 %v772_v15  ;;  %v812_v35 = vadd.f32 %v1941_v25, %v1939_v17  ;;  %v853_v37 = vpack.c.bf16 %v1941_v25, %v1939_v17 }
 0x2d9   : > { %v1949_v39 = vpop.eup %1303  ;;  %1323 = vpow2.f32 %v774_v16 }
 0x2da   : > { %v1951_v43 = vpop.eup %1305  ;;  %1325 = vpow2.f32 %v776_v23  ;;  %v813_v47 = vadd.f32 %v1943_v29, %v812_v35  ;;  %v854_v19 = vpack.c.bf16 %v1949_v39, %v1943_v29 }
 0x2db   : > { %v1956_v21 = vpop.eup %1307  ;;  %1327 = vpow2.f32 %v778_v27 }
 0x2dc   : > { %v1958_v20 = vpop.eup %1309  ;;  %1329 = vpow2.f32 %v780_v31  ;;  %v814_v28 = vadd.f32 %v1949_v39, %v813_v47  ;;  %v855_v22 = vpack.c.bf16 %v1956_v21, %v1951_v43 }
 0x2dd   : > { %v1963_v26 = vpop.eup %1311  ;;  %1331 = vpow2.f32 %v782_v41 }
 0x2de   : > { %v1968_v36 = vpop.eup %1313  ;;  %1333 = vpow2.f32 %v784_v45  ;;  %v815_v34 = vadd.f32 %v1951_v43, %v814_v28  ;;  %v856_v40 = vpack.c.bf16 %v1963_v26, %v1958_v20 }
 0x2df   : > { %v1976_v44 = vpop.eup %1315  ;;  %1335 = vpow2.f32 %v786_v18 }
 0x2e0   : > { %v1981_v38 = vpop.eup %1317  ;;  %1337 = vpow2.f32 %v788_v24  ;;  %v816_v42 = vadd.f32 %v1956_v21, %v815_v34  ;;  %v857_v57 = vpack.c.bf16 %v1976_v44, %v1968_v36 }
 0x2e1   : > { %v1989_v58 = vpop.eup %1319  ;;  %1339 = vpow2.f32 %v790_v32 }
 0x2e2   : > { %v1994_v48 = vpop.eup %1321  ;;  %1341 = vpow2.f32 %v792_v30  ;;  %v817_v49 = vadd.f32 %v1958_v20, %v816_v42  ;;  %v858_v60 = vpack.c.bf16 %v1989_v58, %v1981_v38 }
 0x2e3   : > { %v2002_v62 = vpop.eup %1323  ;;  %1343 = vpow2.f32 %v794_v61 }
 0x2e4   : > { %v2007_v46 = vpop.eup %1325  ;;  %1345 = vpow2.f32 %v796_v55  ;;  %v818_v50 = vadd.f32 %v1963_v26, %v817_v49  ;;  %v859_v0 = vpack.c.bf16 %v2002_v62, %v1994_v48 }
 0x2e5   : > { %v2015_v2 = vpop.eup %1327  ;;  %1347 = vpow2.f32 %v798_v59 }
 0x2e6   : > { %v1330_v51 = vpop.eup %1329  ;;  %1349 = vpow2.f32 %v800_v1  ;;  %v819_v9 = vadd.f32 %v1968_v36, %v818_v50  ;;  %v860_v52 = vpack.c.bf16 %v2015_v2, %v2007_v46  ;;  %v849_v36 = vld [vmem:[#allocation4] sm:$0xff] }
 0x2e7   : > { %v1332_v6 = vpop.eup %1331  ;;  %1351 = vpow2.f32 %v802_v5 }
 0x2e8   : > { %v1334_v10 = vpop.eup %1333  ;;  %1353 = vpow2.f32 %v804_v63  ;;  %v820_v13 = vadd.f32 %v1976_v44, %v819_v9  ;;  %v861_v53 = vpack.c.bf16 %v1332_v6, %v1330_v51  ;;  %v852_v44 = vld [vmem:[#allocation4 + $0x18] sm:$0xff] }
 0x2e9   : > { %v1336_v12 = vpop.eup %1335  ;;  %1355 = vpow2.f32 %v806_v3 }
 0x2ea   : > { %v1338_v7 = vpop.eup %1337  ;;  %1357 = vpow2.f32 %v808_v4  ;;  %v821_v54 = vadd.f32 %v1981_v38, %v820_v13  ;;  %1109 = vmatprep.subr.bf16.mxu1 %v861_v53  ;;  %v862_v14 = vpack.c.bf16 %v1336_v12, %v1334_v10  ;;  %v930_v4 = vstv %s923_s16  ;;  %v927_v53 = vld [vmem:[%s2059_s30 + $0x10] sm:$0xff]  ;;  %s1523_s16 = smov [#allocation9]  }
 0x2eb   : > { %v1340_v15 = vpop.eup %1339  ;;  %1359 = vpow2.f32 %v810_v8  ;;  %1110 = vmatpush3.bf16.msra.mxu1 %v853_v37  ;;  %v926_v8 = vld [vmem:[%s2059_s30] sm:$0xff]  ;;  %s1397_s20 = sshll.u32 %s1523_s16, 4  ;;  %s1398_s20 = int_to_ptr.vmem [resolvable:$false] %s1397_s20 }
 0x2ec   : > { %v1342_v11 = vpop.eup %1341  ;;  %v822_v33 = vadd.f32 %v1989_v58, %v821_v54  ;;  %1111 = vmatprep.subr.bf16.mxu1 %v862_v14  ;;  %v863_v56 = vpack.c.bf16 %v1340_v15, %v1338_v7  ;;  %v851_v58 = vld [vmem:[#allocation4 + $0x10] sm:$0xff]  ;;  %p1400_p1 = scmp.lt.s32.totalorder %s2070_s8, %s1398_s20 }
 0x2ed   : > { %v1344_v16 = vpop.eup %1343 }
 0x2ee   : > { %v1346_v23 = vpop.eup %1345  ;;  %v823_v27 = vadd.f32 %v1994_v48, %v822_v33  ;;  %v864_v31 = vpack.c.bf16 %v1344_v16, %v1342_v11 }
 0x2ef   : > { %v1348_v35 = vpop.eup %1347  ;;  %1112 = vmatpush3.bf16.msra.mxu1 %v854_v19 }
 0x2f0   : > { %v1350_v41 = vpop.eup %1349  ;;  %v824_v45 = vadd.f32 %v2002_v62, %v823_v27  ;;  %1113 = vmatprep.subr.bf16.mxu1 %v863_v56  ;;  %v865_v17 = vpack.c.bf16 %v1348_v35, %v1346_v23  ;;  %v928_v27 = vld [vmem:[%s2059_s30 + $0x20] sm:$0xff] }
 0x2f1   : > { %v1352_v25 = vpop.eup %1351 }
 0x2f2   : > { %v1354_v37 = vpop.eup %1353  ;;  %v825_v47 = vadd.f32 %v2007_v46, %v824_v45  ;;  %v866_v18 = vpack.c.bf16 %v1352_v25, %v1350_v41 }
 0x2f3   : > { %v1356_v24 = vpop.eup %1355  ;;  %1114 = vmatpush3.bf16.msra.mxu1 %v855_v22 }
 0x2f4   : > { %v1358_v28 = vpop.eup %1357  ;;  %v826_v32 = vadd.f32 %v2015_v2, %v825_v47  ;;  %1115 = vmatprep.subr.bf16.mxu1 %v864_v31  ;;  %v867_v29 = vpack.c.bf16 %v1356_v24, %v1354_v37 }
 0x2f5   : > { %v1360_v39 = vpop.eup %1359 }
 0x2f6   : > { %v827_v19 = vadd.f32 %v1330_v51, %v826_v32  ;;  %v868_v30 = vpack.c.bf16 %v1360_v39, %v1358_v28 }
 0x2f7   : > { %1116 = vmatpush3.bf16.msra.mxu1 %v856_v40 }
 0x2f8   : > { %v828_v34 = vadd.f32 %v1332_v6, %v827_v19  ;;  %1117 = vmatprep.subr.bf16.mxu1 %v865_v17 }
 0x2fa   : > { %v829_v61 = vadd.f32 %v1334_v10, %v828_v34 }
 0x2fb   : > { %1118 = vmatpush3.bf16.msra.mxu1 %v857_v57 }
 0x2fc   : > { %v830_v43 = vadd.f32 %v1336_v12, %v829_v61  ;;  %1119 = vmatprep.subr.bf16.mxu1 %v866_v18 }
 0x2fe   : > { %v831_v21 = vadd.f32 %v1338_v7, %v830_v43 }
 0x2ff   : > { %1120 = vmatpush3.bf16.msra.mxu1 %v858_v60 }
 0x300   : > { %v832_v22 = vadd.f32 %v1340_v15, %v831_v21  ;;  %1121 = vmatprep.subr.bf16.mxu1 %v867_v29 }
 0x302   : > { %v833_v55 = vadd.f32 %v1342_v11, %v832_v22 }
 0x303   : > { %1122 = vmatpush3.bf16.msra.mxu1 %v859_v0 }
 0x304   : > { %v834_v20 = vadd.f32 %v1344_v16, %v833_v55  ;;  %1123 = vmatprep.subr.bf16.mxu1 %v868_v30 }
 0x306   : > { %v835_v26 = vadd.f32 %v1346_v23, %v834_v20 }
 0x307   : > { %1124 = vmatpush3.bf16.msra.mxu1 %v860_v52 }
 0x308   : > { %v836_v40 = vadd.f32 %v1348_v35, %v835_v26 }
 0x30a   : > { %v837_v42 = vadd.f32 %v1350_v41, %v836_v40  ;;  %902 = vmatmul.mubr.bf16.vlgmr.msra.gmra.mrb[0].mxu1 %v849_v36  ;;  %v929_v41 = vld [vmem:[%s2059_s30 + $0x30] sm:$0xff]  ;;  %s1399_s30 = scalar_lea.vmem %s1398_s20, 1024 }
 0x30b   : > { %909 = vmatprep.mubr.bf16.mxu1 %v852_v44  ;;  %p1401_p6 = scmp.lt.s32.totalorder %s1399_s30, %s1393_s5 }
 0x30c   : > { %v838_v38 = vadd.f32 %v1352_v25, %v837_v42 }
 0x30d   : > { %p1402_p9 = por %p1401_p6, %p1400_p1 }
 0x30e   : > { %v839_v57 = vadd.f32 %v1354_v37, %v838_v38 }
 0x30f   : > { %p1403_p3 = pnand %p1402_p9, %p1396_p0 }
 0x310   : > { %v840_v59 = vadd.f32 %v1356_v24, %v839_v57 }
 0x312   : > { %v841_v1 = vadd.f32 %v1358_v28, %v840_v59  ;;  %910 = vmatmul.mubr.bf16.gmra.mrb[4].mxu1 %v851_v58 }
 0x314   : > { %v842_v48 = vadd.f32 %v1360_v39, %v841_v1 }
 0x316   : > { %v843_v49 = vrot.slane %v842_v48, 4 }
 0x318   : > { %v844_v60 = vadd.f32 %v843_v49, %v842_v48 }
 0x31a   : > { %v845_v62 = vrot.slane %v844_v60, 2 }
 0x31c   : > { %v846_v5 = vadd.f32 %v845_v62, %v844_v60 }
 0x31e   : > { %v847_v46 = vrot.slane %v846_v5, 1 }
 0x320   : > { %v848_v63 = vadd.f32 %v847_v46, %v846_v5 }
 0x322   : > { %1361 = vrcp.f32 %v848_v63 }
 0x32c   : > { %v1362_v51 = vpop.eup %1361 }
 0x3dd   : > { %v1125_v50 = vpop.f32.mrb[0].mxu1 }
 0x3de   : > { %v1126_v0 = vpop.f32.mrb[1].mxu1 }
 0x3df   : > { %v1127_v2 = vadd.f32 %v1126_v0, %v1125_v50  ;;  %v1128_v3 = vpop.f32.mrb[2].mxu1 }
 0x3e0   : > { %v1129_v9 = vpop.f32.mrb[3].mxu1 }
 0x3e1   : > { %v919_v52 = vmul.f32 %v1362_v51, %v1127_v2  ;;  %v1130_v6 = vadd.f32 %v1129_v9, %v1128_v3 }
 0x3e3   : > { %v931_v10 = vmul.f32 %v930_v4, %v919_v52  ;;  %v920_v13 = vmul.f32 %v1362_v51, %v1130_v6 }
 0x3e5   : > { %v935_v12 = vadd.f32 %v931_v10, %v926_v8  ;;  %v932_v7 = vmul.f32 %v930_v4, %v920_v13  ;;  %v1131_v54 = vpop.f32.mrb[4].mxu1 }
 0x3e6   : > { %v1132_v14 = vpop.f32.mrb[5].mxu1 }
 0x3e7   : > { %939 = vst [vmem:[%s1711_s11] sm:$0xff] %v935_v12  ;;  %v936_v15 = vadd.f32 %v932_v7, %v927_v53  ;;  %v1133_v11 = vadd.f32 %v1132_v14, %v1131_v54  ;;  %v1134_v33 = vpop.f32.mrb[6].mxu1 }
 0x3e8   : > { %v1135_v56 = vpop.f32.mrb[7].mxu1 }
 0x3e9   : > { %940 = vst [vmem:[%s1711_s11 + $0x8] sm:$0xff] %v936_v15  ;;  %v921_v16 = vmul.f32 %v1362_v51, %v1133_v11  ;;  %v1136_v23 = vadd.f32 %v1135_v56, %v1134_v33 }
 0x3eb   : > { %v933_v31 = vmul.f32 %v930_v4, %v921_v16  ;;  %v922_v35 = vmul.f32 %v1362_v51, %v1136_v23 }
 0x3ed   : > { %v937_v45 = vadd.f32 %v933_v31, %v928_v27  ;;  %v934_v17 = vmul.f32 %v930_v4, %v922_v35 }
 0x3ef   : > { %941 = vst [vmem:[%s1711_s11 + $0x10] sm:$0xff] %v937_v45  ;;  %v938_v25 = vadd.f32 %v934_v17, %v929_v41 }
 0x3f1   : > { %942 = vst [vmem:[%s1711_s11 + $0x18] sm:$0xff] %v938_v25 }
 0x3f2   : > { %1406 = shalt.err (!%p1403_p3)
}
 0x3f3   : > { %s1407_s28 = scalar_lea.hbm %s2075_s23, 512  ;;  %s1411_s9 = scalar_lea.hbm %s2146_s4, 2048 }
 0x3f4   : > { %p1408_p11 = scmp.ne.s32.totalorder %s2075_s23, %s1407_s28  ;;  %p1412_p8 = scmp.lt.u32.totalorder %s2075_s23, %s2146_s4 }
 0x3f5   : > { %p1413_p10 = scmp.lt.u32.totalorder %s1411_s9, %s1407_s28  ;;  %p1415_p7 = scmp.lt.u32.totalorder %s1407_s28, %s2075_s23 }
 0x3f6   : > { %p1409_p13 = pnand %p1408_p11, %p2156_p2 }
 0x3f7   : > { %p1414_p12 = por %p1413_p10, %p1412_p8 }
 0x3f8   : > { %p1410_p5 = pneg %p1409_p13 }
 0x3f9   : > { %p1416_p4 = por %p1415_p7, %p1414_p12 }
 0x3fb   : > { %p1417_p0 = pnand %p1416_p4, %p1410_p5 }
 0x3fd   : > { %1420 = shalt.err (!%p1417_p0)
}
 0x3fe   : > { %s1524_s27 = smov 128   ;;  %s1525_s5 = smov 256  }
 0x3ff   : > { %s1526_s16 = smov 8  }
 0x400   : > { %1186 = dma.vmem_to_hbm [thread:$0]  (%p2156_p2), %s2070_s8, 512, %s2075_s23, %s2081_s6, %s1524_s27, %s1525_s5, %s1526_s16  }
 0x401 PF: > { %p1197_p1 = scmp.ge.s32.totalorder %s1515_s26, 2  ;;  %s973_s20 = sand.u32 1, %s1475_s17  }
 0x402   : > { %p2157_p6 = scmp.ne.s32.totalorder %s2153_s15, 0  ;;  %s974_s30 = scalar_lea.sflag [#allocation8], %s973_s20 }
 0x404   : > { %p1193_p9 = pnand %p1197_p1, %p2157_p6 }
 0x406   : > { %1470 = dma.done.wait (!%p1193_p9), %s974_s30, 512  }
 0x407   : > { %1472 = vsyncadd (!%p1193_p9), %s974_s30, 4294966784  ;;  %s21_s26 = sadd.s32 1, %s1515_s26   ;;  %s2158_s12 = sld [smem:[#allocation12_spill]] }
 0x408   : > { %p18_p3 = scmp.ge.s32.totalorder %s21_s26, 6   ;;  %s2159_s17 = smov %s1479_s18 }
 0x409   : > { %s2160_s18 = smov %s1483_s19  ;;  %s2161_s19 = smov %s1645_s14 }
 0x40a   : > { %s2162_s20 = smov %s1491_s21  ;;  %s2163_s21 = smov %s1495_s22 }
 0x40b   : > { %s2164_s22 = smov %s1642_s13  ;;  %s2165_s23 = smov %s1507_s3 }
 0x40c   : > { %s2166_s24 = smov %s1511_s25  ;;  %s2167_s3 = smov %s2170_s29 }
 0x40d   : > { %s2168_s25 = smov %s2158_s12  ;;  %20 = sbr.rel (!%p18_p3) target bundleno = 11 (0xb), region = 87 }
 0x414   :  { %979 = vsyncpa [#allocation7], 1 }
 0x415   :  { %981 = vsyncpa [#allocation7 + $0x1], 1 }
 0x416   :  { %982 = vsyncpa [#allocation8], 1 }
 0x417   :  { %984 = vsyncpa [#allocation8 + $0x1], 1 }

// kernel: tpu_custom_call.1
= control target key start
LH: loop header
LB: loop body
LE: loop exit
PB: predicated region body
PF: predicated region fallthrough
CT: control target
= control target key end

     0   :  { %s2142_s0 = inlined_call_operand.hbm [shape: f32[2,32,256], index: 0, kind: input, shape index: {}]   ;;  %s2143_s1 = inlined_call_operand.vmem [shape: f32[40,32], index: 1, kind: input, shape index: {}]   ;;  %s2144_s2 = inlined_call_operand.vmem [shape: f32[40,1], index: 2, kind: input, shape index: {}]   ;;  %s2145_s3 = inlined_call_operand.<no memory space> [shape: f32[1,1], index: 3, kind: input, shape index: {}]   ;;  %s2146_s4 = inlined_call_operand.hbm [shape: f32[2,32,256], index: 4, kind: output, shape index: {}]  }
   0x1   :  { %9 = sst [smem:[#allocation5]] %s2145_s3 }
   0x2   :  { %10 = vsyncpa [#allocation7], 0 }
   0x3   :  { %12 = vsyncpa [#allocation7 + $0x1], 0 }
   0x4   :  { %13 = vsyncpa [#allocation8], 0 }
   0x5   :  { %15 = vsyncpa [#allocation8 + $0x1], 0  ;;  %s1555_s17 = smov 0   ;;  %s1557_s18 = smov 0  }
   0x6   :  { %s1559_s19 = smov 0   ;;  %s1561_s20 = smov 0  }
   0x7   :  { %s1563_s21 = smov 0   ;;  %s1565_s22 = smov 0  }
   0x8   :  { %s1567_s23 = smov 0   ;;  %s1569_s24 = smov 0  }
   0x9   :  { %s1571_s3 = smov 0   ;;  %s1573_s25 = smov 0  }
   0xa   :  { %s1575_s26 = smov 0  }
   0xb LB: > { %s1048_s27 = sadd.s32 4294967295, %s1515_s26   ;;  %s1049_s28 = sadd.s32 4294967294, %s1515_s26   ;;  %s1515_s26 = sphi %s1575_s26, %s21_s26   ;;  %s1511_s25 = sphi %s1573_s25, %s2168_s25   ;;  %s1507_s3 = sphi %s1571_s3, %s2167_s3   ;;  %s1503_s24 = sphi %s1569_s24, %s2166_s24   ;;  %s1499_s23 = sphi %s1567_s23, %s2165_s23   ;;  %s1495_s22 = sphi %s1565_s22, %s2164_s22   ;;  %s1491_s21 = sphi %s1563_s21, %s2163_s21   ;;  %s1487_s20 = sphi %s1561_s20, %s2162_s20   ;;  %s1483_s19 = sphi %s1559_s19, %s2161_s19   ;;  %s1479_s18 = sphi %s1557_s18, %s2160_s18   ;;  %s1475_s17 = sphi %s1555_s17, %s2159_s17  }
   0xc   : > { %s30_s29 = sadd.s32 1, %s1507_s3  ;;  %s33_s30 = sadd.s32 1, %s1511_s25 }
   0xd   : > { %p31_p0 = scmp.ge.s32.totalorder %s30_s29, 2  ;;  %s40_s5 = sadd.s32 1, %s1495_s22 }
   0xe   : > { %p47_p1 = scmp.ne.s32.totalorder %s1495_s22, %s1491_s21  ;;  %p48_p2 = scmp.eq.s32.totalorder %s1515_s26, 0 }
   0xf   : > { %s2170_s29 = smov (%p31_p0, %s30_s29), 0  ;;  %s2172_s30 = smov (!%p31_p0, %s33_s30), %s1511_s25 }
  0x10   : > { %p1619_p3 = por %p48_p2, %p47_p1  ;;  %p53_p4 = scmp.ne.s32.totalorder %s1491_s21, %s1487_s20 }
  0x11   : > { %p35_p5 = scmp.ge.s32.totalorder %s2172_s30, 2  ;;  %p54_p6 = scmp.eq.s32.totalorder %s1048_s27, 0 }
  0x12   : > { %s127_s7 = ssub.s32 %s1507_s3, %s2170_s29  ;;  %s131_s8 = sadd.s32 1, %s1483_s19 }
  0x13   : > { %s2174_s30 = smov (%p35_p5, %s2172_s30), 0  ;;  %p1629_p7 = por %p54_p6, %p53_p4 }
  0x14   : > { %2150 = sst [smem:[#allocation12_spill]] %s2174_s30  ;;  %p141_p8 = scmp.ne.s32.totalorder %s1483_s19, %s1479_s18 }
  0x15   : > { %s37_s10 = ssub.s32 %s1511_s25, %s2174_s30  ;;  %p142_p9 = scmp.eq.s32.totalorder %s1048_s27, 3 }
  0x16   : > { %p38_p10 = scmp.eq.s32.totalorder %s37_s10, 0  ;;  %s128_s11 = sor.u32 %s127_s7, %s37_s10 }
  0x17   : > { %p129_p11 = scmp.eq.s32.totalorder %s128_s11, 0  ;;  %p1637_p12 = por %p142_p9, %p141_p8 }
  0x18   : > { %s1642_s13 = scalar_select %p38_p10, %s1495_s22, %s40_s5  }
  0x19   : > { %s2152_s12 = scalar_select %p1637_p12, 1, 0 }
  0x1a   : > { %s1645_s14 = scalar_select %p129_p11, %s1483_s19, %s131_s8  }
  0x1b   : > { %p147_p13 = scmp.ne.s32.totalorder %s1479_s18, %s1475_s17  ;;  %p148_p0 = scmp.eq.s32.totalorder %s1049_s28, 3 }
  0x1c   : > { %p1196_p1 = scmp.lt.s32.totalorder %s1515_s26, 4  ;;  %s177_s16 = sand.u32 1, %s1495_s22  }
  0x1d   : > { %p1650_p2 = por %p148_p0, %p147_p13  ;;  %s1052_s20 = sshll.u32 %s177_s16, 6 }
  0x1e   : > { %s1091_s27 = sshll.u32 %s1511_s25, 10  ;;  %s181_s5 = scalar_lea.vmem [#allocation6], %s1052_s20 }
  0x1f   : > { %s2153_s15 = scalar_select %p1650_p2, 1, 0 }
  0x20   : > { %s1659_s11 = scalar_lea.hbm %s2142_s0, %s1091_s27  ;;  %s188_s8 = sshll.u32 %s181_s5, 4  ;;  %s1661_s8 = int_to_ptr.vmem [resolvable:$true] %s188_s8 }
  0x21   : > { %p1665_p4 = pnand %p1196_p1, %p1619_p3  ;;  %s1670_s30 = scalar_lea.sflag [#allocation7], %s177_s16 }
  0x22   : > { %s1363_s27 = scalar_lea.hbm %s1659_s11, 1024  ;;  %s1368_s6 = scalar_lea.hbm %s2142_s0, 2048 }
  0x23   : > { %p1364_p6 = scmp.ne.s32.totalorder %s1659_s11, %s1363_s27  ;;  %p1365_p8 = pneg %p1665_p4 }
  0x24   : > { %p1369_p3 = scmp.lt.u32.totalorder %s1659_s11, %s2142_s0  ;;  %p1370_p11 = scmp.lt.u32.totalorder %s1368_s6, %s1363_s27 }
  0x25   : > { %p1366_p9 = pnand %p1365_p8, %p1364_p6  ;;  %p1372_p0 = scmp.lt.u32.totalorder %s1363_s27, %s1659_s11 }
  0x26   : > { %p1371_p13 = por %p1370_p11, %p1369_p3 }
  0x27   : > { %p1367_p10 = pneg %p1366_p9 }
  0x28   : > { %p1373_p1 = por %p1372_p0, %p1371_p13 }
  0x2a   : > { %p1374_p5 = pnand %p1373_p1, %p1367_p10 }
  0x2c   : > { %1377 = shalt.err (!%p1374_p5)
}
  0x2d   : > { %s1378_s16 = scalar_lea.vmem %s1661_s8, 1024  ;;  %s1517_s20 = smov [#allocation6]  }
  0x2e   : > { %p1379_p6 = scmp.ne.s32.totalorder %s1661_s8, %s1378_s16  ;;  %s1383_s7 = sshll.u32 %s1517_s20, 4  ;;  %s1384_s7 = int_to_ptr.vmem [resolvable:$false] %s1383_s7 }
  0x2f   : > { %s1385_s10 = scalar_lea.vmem %s1384_s7, 2048  ;;  %p1386_p12 = scmp.lt.s32.totalorder %s1661_s8, %s1384_s7 }
  0x30   : > { %p1381_p9 = pnand %p1379_p6, %p1365_p8  ;;  %p1387_p3 = scmp.lt.s32.totalorder %s1385_s10, %s1378_s16 }
  0x32   : > { %p1382_p2 = pneg %p1381_p9  ;;  %p1388_p11 = por %p1387_p3, %p1386_p12 }
  0x34   : > { %p1389_p13 = pnand %p1388_p11, %p1382_p2 }
  0x36   : > { %1392 = shalt.err (!%p1389_p13)
}
  0x37   : > { %s1518_s27 = smov 256   ;;  %s1519_s6 = smov 16  }
  0x38   : > { %1191 = dma.hbm_to_vmem [thread:$0]  (!%p1665_p4), %s1659_s11, 1024, %s1661_s8, %s1670_s30, %s1518_s27, %s1518_s27, %s1519_s6  }
  0x39   : > { %p196_p5 = scmp.lt.s32.totalorder %s1515_s26, 5  ;;  %p2155_p8 = scmp.ge.s32.totalorder %s1515_s26, 1 }
  0x3b   : > { %p197_p10 = pnand %p2155_p8, %p196_p5 }
  0x3c   : > { %s202_s5 = sand.u32 (!%p197_p10), 1, %s1491_s21  }
  0x3d   : > { %200 = sbr.rel (%p197_p10) target bundleno = 1025 (0x401), region = 36  ;;  %s1056_s16 = sshll.u32 (!%p197_p10), %s202_s5, 6 }
  0x3e   : > { %s203_s20 = scalar_lea.sflag (!%p197_p10), [#allocation7], %s202_s5  ;;  %s1702_s7 = scalar_lea.vmem (!%p197_p10), [#allocation6], %s1056_s16 }
  0x44   : > { %1466 = dma.done.wait (%p1629_p7), %s203_s20, 1024  }
  0x45   : > { %1468 = vsyncadd (%p1629_p7), %s203_s20, 4294966272  ;;  %s228_s28 = sand.u32 1, %s1479_s18   ;;  %p1058_p12 = scmp.ne.s32.totalorder %s1499_s23, 0 }
  0x46   : > { %s1057_s30 = sshll.u32 %s228_s28, 5  ;;  %v237_v0 = vld [vmem:[%s1702_s7 + $0x8] sm:$0xff] (!%p1058_p12)  ;;  %v239_v1 = vld [vmem:[%s1702_s7 + $0x18] sm:$0xff] (!%p1058_p12)  ;;  %v236_v2 = vld [vmem:[%s1702_s7] sm:$0xff] (!%p1058_p12)  ;;  %v1520_v7 = vmov (!%p1058_p12), 0.0   ;;  %v1521_v12 = vmov (!%p1058_p12), 0   ;;  %v398_v28 = vlaneseq (!%p1058_p12) }
  0x47   : > { %s1711_s11 = scalar_lea.vmem [#allocation9], %s1057_s30  ;;  %235 = sbr.rel (%p1058_p12) target bundleno = 307 (0x133), region = 44  ;;  %v1171_v3 = vpack.c.bf16 (!%p1058_p12), %v239_v1, %v237_v0  ;;  %v238_v4 = vld [vmem:[%s1702_s7 + $0x10] sm:$0xff] (!%p1058_p12)  ;;  %v241_v5 = vld [vmem:[%s1702_s7 + $0x28] sm:$0xff] (!%p1058_p12)  ;;  %v243_v6 = vld [vmem:[%s1702_s7 + $0x38] sm:$0xff] (!%p1058_p12)  ;;  %359 = vmatprep.mubr.f32.mxu0 (!%p1058_p12), %v1520_v7  ;;  %377 = vmatprep.mubr.f32.mxu1 (!%p1058_p12), %v1520_v7  ;;  %vm279_vm0 = vcmask (!%p1058_p12), 261120  }
  0x48   : > { %v1173_v8 = vpack.c.bf16 (!%p1058_p12), %v238_v4, %v236_v2  ;;  %v1175_v9 = vpack.c.bf16 (!%p1058_p12), %v243_v6, %v241_v5  ;;  %v240_v10 = vld [vmem:[%s1702_s7 + $0x20] sm:$0xff] (!%p1058_p12)  ;;  %v242_v11 = vld [vmem:[%s1702_s7 + $0x30] sm:$0xff] (!%p1058_p12)  ;;  %1295 = vset.pattern.permute.xlu0 (!%p1058_p12), %v1521_v12  ;;  %1296 = vset.pattern.permute.xlu1 (!%p1058_p12), %v1521_v12  ;;  %v249_v14 = vld [vmem:[%s2144_s2] sm:$0xff] (!%p1058_p12)  ;;  %v1522_v26 = vmov (!%p1058_p12), 1983009808   ;;  %v399_v31 = vshrl.u32 (!%p1058_p12), %v398_v28, 7 }
  0x49   : > { %1172 = vmatprep.subr.bf16.mxu0 (!%p1058_p12), %v1171_v3  ;;  %1179 = vmatprep.subr.bf16.mxu1 (!%p1058_p12), %v1171_v3  ;;  %v1177_v13 = vpack.c.bf16 (!%p1058_p12), %v242_v11, %v240_v10  ;;  %v251_v15 = vld [vmem:[%s2144_s2 + $0x10] sm:$0xff] (!%p1058_p12)  ;;  %v250_v16 = vld [vmem:[%s2144_s2 + $0x8] sm:$0xff] (!%p1058_p12)  ;;  %v252_v17 = vld [vmem:[%s2144_s2 + $0x18] sm:$0xff] (!%p1058_p12)  ;;  %v396_v27 = vunpack.c.l.s4 (!%p1058_p12), %v1522_v26 }
  0x4a   : > { %1174 = vmatpush1.bf16.msra.mxu0 (!%p1058_p12), %v1173_v8  ;;  %1181 = vmatpush1.bf16.msra.mxu1 (!%p1058_p12), %v1173_v8  ;;  %v244_v18 = vld [vmem:[%s2143_s1] sm:$0xff] (!%p1058_p12)  ;;  %v247_v19 = vld [vmem:[%s2143_s1 + $0x18] sm:$0xff] (!%p1058_p12)  ;;  %v245_v21 = vld [vmem:[%s2143_s1 + $0x8] sm:$0xff] (!%p1058_p12) }
  0x4b   : > { %1176 = vmatprep.subr.bf16.mxu0 (!%p1058_p12), %v1175_v9  ;;  %1180 = vmatprep.subr.bf16.mxu1 (!%p1058_p12), %v1175_v9  ;;  %v253_v20 = vld [vmem:[%s2144_s2 + $0x20] sm:$0xff] (!%p1058_p12)  ;;  %v246_v23 = vld [vmem:[%s2143_s1 + $0x10] sm:$0xff] (!%p1058_p12)  ;;  %v397_v30 = vunpack.c.0.s8 (!%p1058_p12), %v396_v27 }
  0x4c   : > { %256 = vperm.xlu0 (!%p1058_p12), %1295, %v249_v14   ;;  %266 = vperm.xlu1 (!%p1058_p12), %1296, %v251_v15   ;;  %v248_v22 = vld [vmem:[%s2143_s1 + $0x20] sm:$0xff] (!%p1058_p12) }
  0x4d   : > { %v400_v39 = vsub.s32 (!%p1058_p12), %v397_v30, %v399_v31 }
  0x4e   : > { %1178 = vmatpush1.bf16.msra.mxu0 %v1177_v13  ;;  %1182 = vmatpush1.bf16.msra.mxu1 %v1177_v13 }
  0x50   : > { %261 = vperm.xlu0 %1295, %v250_v16   ;;  %271 = vperm.xlu1 %1296, %v252_v17  }
  0x51   : > { %1059 = vmatmul.mubr.msk.f32.vlgmr.msra.gmra.mrb[0].mxu0 %vm279_vm0, %v244_v18  ;;  %1062 = vmatmul.mubr.msk.f32.vlgmr.msra.gmra.mrb[0].mxu1 %vm279_vm0, %v247_v19 }
  0x52   : > { %365 = vmatprep.mubr.f32.mxu0 %v1520_v7  ;;  %383 = vmatprep.mubr.f32.mxu1 %v1520_v7 }
  0x54   : > { %276 = vperm.xlu0 %1295, %v253_v20  }
  0x55   : > { %1060 = vmatmul.mubr.msk.f32.gmra.mrb[2].mxu0 %vm279_vm0, %v245_v21  ;;  %1063 = vmatmul.mubr.msk.f32.gmra.mrb[2].mxu1 %vm279_vm0, %v248_v22 }
  0x56   : > { %371 = vmatprep.mubr.f32.mxu0 %v1520_v7 }
  0x59   : > { %1061 = vmatmul.mubr.msk.f32.gmra.mrb[4].mxu0 %vm279_vm0, %v246_v23 }
  0xcb   : > { %v257_v24 = vpop.permute.xlu0 %256  ;;  %v267_v25 = vpop.permute.xlu1 %266 }
  0xcf   : > { %v262_v29 = vpop.permute.xlu0 %261  ;;  %v272_v32 = vpop.permute.xlu1 %271 }
  0xd3   : > { %v277_v40 = vpop.permute.xlu0 %276 }
 0x124   : > { %v361_v33 = vpop.f32.mrb[0].mxu0  ;;  %v379_v34 = vpop.f32.mrb[0].mxu1 }
 0x125   : > { %v362_v35 = vadd.f32 %v361_v33, %v257_v24  ;;  %v363_v36 = vpop.f32.mrb[1].mxu0  ;;  %v381_v37 = vpop.f32.mrb[1].mxu1  ;;  %v380_v41 = vadd.f32 %v379_v34, %v272_v32 }
 0x126   : > { %v364_v38 = vadd.f32 %v363_v36, %v257_v24  ;;  %v382_v43 = vadd.f32 %v381_v37, %v272_v32 }
 0x128   : > { %v1064_v42 = vpack.c.bf16 %v364_v38, %v362_v35  ;;  %v367_v44 = vpop.f32.mrb[2].mxu0  ;;  %v385_v45 = vpop.f32.mrb[2].mxu1 }
 0x129   : > { %v386_v46 = vadd.f32 %v385_v45, %v277_v40  ;;  %v369_v47 = vpop.f32.mrb[3].mxu0  ;;  %v387_v48 = vpop.f32.mrb[3].mxu1  ;;  %v368_v55 = vadd.f32 %v367_v44, %v262_v29 }
 0x12a   : > { %v401_v49 = vrot.slane %v1064_v42, %v400_v39  ;;  %1065 = vst.sshfl [vmem:[#allocation2] sm:$0x33 pattern:$0x76325410] %v1064_v42  ;;  %v388_v50 = vadd.f32 %v387_v48, %v277_v40  ;;  %v370_v58 = vadd.f32 %v369_v47, %v262_v29 }
 0x12b   : > { %v409_v51 = vpack.c.bf16 %v386_v46, %v380_v41 }
 0x12c   : > { %v404_v52 = vcombine.high %v401_v49, %v401_v49  ;;  %v410_v53 = vpack.c.bf16 %v388_v50, %v382_v43  ;;  %v373_v54 = vpop.f32.mrb[4].mxu0 }
 0x12d   : > { %413 = vst [vmem:[#allocation4 + $0x10] sm:$0xff] %v409_v51  ;;  %v374_v56 = vadd.f32 %v373_v54, %v267_v25  ;;  %v375_v57 = vpop.f32.mrb[5].mxu0 }
 0x12e   : > { %406 = vst [vmem:[#allocation3] sm:$0xf] %v404_v52  ;;  %414 = vst [vmem:[#allocation4 + $0x18] sm:$0xff] %v410_v53  ;;  %v376_v59 = vadd.f32 %v375_v57, %v267_v25 }
 0x12f   : > { %v407_v60 = vpack.c.bf16 %v374_v56, %v368_v55 }
 0x130   : > { %v408_v61 = vpack.c.bf16 %v376_v59, %v370_v58 }
 0x131   : > { %411 = vst [vmem:[#allocation4] sm:$0xff] %v407_v60 }
 0x132   : > { %412 = vst [vmem:[#allocation4 + $0x8] sm:$0xff] %v408_v61 }
 0x133 PF: > { %s1066_s10 = sshll.u32 %s1499_s23, 7  ;;  %vm514_vm1 = vcmask 1041408   ;;  %vm465_vm2 = vcmask 31744   ;;  %s923_s16 = sld [smem:[#allocation5]] }
 0x134   : > { %s1758_s27 = sshra.s32 %s1066_s10, 7  ;;  %s958_s8 = sshll.u32 %s1711_s11, 4  ;;  %s2070_s8 = int_to_ptr.vmem [resolvable:$true] %s958_s8 }
 0x135   : > { %v1068_v62 = vld.sshfl [vmem:[#allocation3] sm:$0x33 pattern:$0x76325410]  ;;  %s1067_s6 = sshll.u32 %s1758_s27, 1  ;;  %s1085_s20 = sshll.u32 %s1758_s27, 3 }
 0x136   : > { %433 = vxpose.xlu0.c.b16.start.end [1/1] (short) %v1068_v62, 128  ;;  %s419_s5 = scalar_lea.vmem [#allocation2], %s1067_s6  ;;  %v430_v1 = vcombine.high %v1068_v62, %v1068_v62  ;;  %s2059_s30 = scalar_lea.vmem %s1702_s7, %s1085_s20 [#allocation6] }
 0x137   : > { %v420_v63 = vld [vmem:[%s419_s5] sm:$0x3]  ;;  %s1087_s7 = sshll.u32 %s1503_s24, 3  ;;  %s2081_s6 = scalar_lea.sflag [#allocation8], %s228_s28 }
 0x138   : > { %1183 = vmatprep.subr.msk.bf16.mxu0 %vm514_vm1, %v420_v63  ;;  %v516_v0 = vsel %vm514_vm1, %v420_v63, 0  ;;  %s955_s9 = sadd.s32 %s1499_s23, %s1087_s7  ;;  %s1393_s5 = scalar_lea.vmem %s2070_s8, 512 }
 0x139   : > { %1138 = vmatpush3.bf16.msra.mxu0 %v516_v0  ;;  %v850_v51 = vld [vmem:[#allocation4 + $0x8] sm:$0xff]  ;;  %s1088_s24 = sshll.u32 %s955_s9, 7  ;;  %p1394_p7 = scmp.ne.s32.totalorder %s2070_s8, %s1393_s5 }
 0x13a   : > { %901 = vmatprep.mubr.bf16.mxu1 %v850_v51  ;;  %s2075_s23 = scalar_lea.hbm %s2146_s4, %s1088_s24  ;;  %p2156_p2 = scmp.ne.s32.totalorder %s2152_s12, 0 }
 0x13c   : > { %p1395_p4 = pnand %p1394_p7, %p2156_p2 }
 0x13e   : > { %p1396_p0 = pneg %p1395_p4 }
 0x153   : > { %449 = vxpose.xlu0.c.b16.start.end [1/1] (short) %v430_v1, 128 }
 0x19c   : > { %v441_v2 = vpop.trf.xlu0 }
 0x19d   : > { %1139 = vmatprep.mubr.msk.bf16.mxu0 %vm465_vm2, %v441_v2 }
 0x1a0   : > { %v442_v3 = vpop.trf.xlu0 }
 0x1a1   : > { %1140 = vmatmul.mubr.msk.bf16.vlgmr.msra.gmra.mrb[0].mxu0 %vm465_vm2, %v442_v3 }
 0x1a4   : > { %v443_v4 = vpop.trf.xlu0 }
 0x1a5   : > { %1143 = vmatprep.mubr.msk.bf16.mxu0 %vm465_vm2, %v443_v4 }
 0x1a8   : > { %v444_v5 = vpop.trf.xlu0 }
 0x1a9   : > { %1144 = vmatmul.mubr.msk.bf16.gmra.mrb[4].mxu0 %vm465_vm2, %v444_v5 }
 0x1ac   : > { %v445_v6 = vpop.trf.xlu0 }
 0x1ad   : > { %1147 = vmatprep.mubr.msk.bf16.mxu0 %vm465_vm2, %v445_v6 }
 0x1b0   : > { %v446_v7 = vpop.trf.xlu0 }
 0x1b1   : > { %1148 = vmatmul.mubr.msk.bf16.gmra.mrb[8].mxu0 %vm465_vm2, %v446_v7 }
 0x1b4   : > { %v447_v8 = vpop.trf.xlu0 }
 0x1b5   : > { %1151 = vmatprep.mubr.msk.bf16.mxu0 %vm465_vm2, %v447_v8 }
 0x1b8   : > { %v448_v9 = vpop.trf.xlu0 }
 0x1b9   : > { %1152 = vmatmul.mubr.msk.bf16.gmra.mrb[12].mxu0 %vm465_vm2, %v448_v9 }
 0x1bc   : > { %v457_v10 = vpop.trf.xlu0 }
 0x1bd   : > { %1155 = vmatprep.mubr.msk.bf16.mxu0 %vm465_vm2, %v457_v10 }
 0x1c0   : > { %v458_v11 = vpop.trf.xlu0 }
 0x1c1   : > { %1156 = vmatmul.mubr.msk.bf16.gmra.mrb[16].mxu0 %vm465_vm2, %v458_v11 }
 0x1c4   : > { %v459_v12 = vpop.trf.xlu0 }
 0x1c5   : > { %1159 = vmatprep.mubr.msk.bf16.mxu0 %vm465_vm2, %v459_v12 }
 0x1c8   : > { %v460_v13 = vpop.trf.xlu0 }
 0x1c9   : > { %1160 = vmatmul.mubr.msk.bf16.gmra.mrb[20].mxu0 %vm465_vm2, %v460_v13 }
 0x1cc   : > { %v461_v14 = vpop.trf.xlu0 }
 0x1cd   : > { %1163 = vmatprep.mubr.msk.bf16.mxu0 %vm465_vm2, %v461_v14 }
 0x1d0   : > { %v462_v15 = vpop.trf.xlu0 }
 0x1d1   : > { %1164 = vmatmul.mubr.msk.bf16.gmra.mrb[24].mxu0 %vm465_vm2, %v462_v15 }
 0x1d4   : > { %v463_v16 = vpop.trf.xlu0 }
 0x1d5   : > { %1167 = vmatprep.mubr.msk.bf16.mxu0 %vm465_vm2, %v463_v16 }
 0x1d8   : > { %v464_v17 = vpop.trf.xlu0 }
 0x1d9   : > { %1168 = vmatmul.mubr.msk.bf16.gmra.mrb[28].mxu0 %vm465_vm2, %v464_v17 }
 0x274   : > { %v1777_v18 = vpop.f32.mrb[0].mxu0 }
 0x275   : > { %v1779_v19 = vpop.f32.mrb[1].mxu0 }
 0x276   : > { %v1781_v20 = vpop.f32.mrb[2].mxu0 }
 0x277   : > { %v1783_v21 = vpop.f32.mrb[3].mxu0 }
 0x27c   : > { %v1785_v22 = vpop.f32.mrb[4].mxu0 }
 0x27d   : > { %v681_v23 = vmax.f32 %v1777_v18, %v1785_v22  ;;  %v1789_v24 = vpop.f32.mrb[5].mxu0 }
 0x27e   : > { %v679_v25 = vmax.f32 %v1779_v19, %v1789_v24  ;;  %v1793_v26 = vpop.f32.mrb[6].mxu0 }
 0x27f   : > { %v682_v27 = vmax.f32 %v1781_v20, %v1793_v26  ;;  %v1797_v28 = vpop.f32.mrb[7].mxu0 }
 0x280   : > { %v680_v29 = vmax.f32 %v1783_v21, %v1797_v28 }
 0x284   : > { %v1801_v30 = vpop.f32.mrb[8].mxu0 }
 0x285   : > { %v685_v31 = vmax.f32 %v681_v23, %v1801_v30  ;;  %v1804_v32 = vpop.f32.mrb[9].mxu0 }
 0x286   : > { %v683_v33 = vmax.f32 %v679_v25, %v1804_v32  ;;  %v1807_v34 = vpop.f32.mrb[10].mxu0 }
 0x287   : > { %v686_v35 = vmax.f32 %v682_v27, %v1807_v34  ;;  %v1810_v36 = vpop.f32.mrb[11].mxu0 }
 0x288   : > { %v684_v37 = vmax.f32 %v680_v29, %v1810_v36 }
 0x28c   : > { %v1813_v38 = vpop.f32.mrb[12].mxu0 }
 0x28d   : > { %v689_v39 = vmax.f32 %v685_v31, %v1813_v38  ;;  %v1816_v40 = vpop.f32.mrb[13].mxu0 }
 0x28e   : > { %v687_v41 = vmax.f32 %v683_v33, %v1816_v40  ;;  %v1819_v42 = vpop.f32.mrb[14].mxu0 }
 0x28f   : > { %v690_v43 = vmax.f32 %v686_v35, %v1819_v42  ;;  %v1822_v44 = vpop.f32.mrb[15].mxu0 }
 0x290   : > { %v688_v45 = vmax.f32 %v684_v37, %v1822_v44 }
 0x294   : > { %v1825_v46 = vpop.f32.mrb[16].mxu0 }
 0x295   : > { %v693_v47 = vmax.f32 %v689_v39, %v1825_v46  ;;  %v1828_v48 = vpop.f32.mrb[17].mxu0 }
 0x296   : > { %v691_v49 = vmax.f32 %v687_v41, %v1828_v48  ;;  %v1831_v50 = vpop.f32.mrb[18].mxu0 }
 0x297   : > { %v694_v52 = vmax.f32 %v690_v43, %v1831_v50  ;;  %v1834_v53 = vpop.f32.mrb[19].mxu0 }
 0x298   : > { %v692_v54 = vmax.f32 %v688_v45, %v1834_v53 }
 0x29c   : > { %v1837_v55 = vpop.f32.mrb[20].mxu0 }
 0x29d   : > { %v697_v56 = vmax.f32 %v693_v47, %v1837_v55  ;;  %v1840_v57 = vpop.f32.mrb[21].mxu0 }
 0x29e   : > { %v695_v58 = vmax.f32 %v691_v49, %v1840_v57  ;;  %v1843_v59 = vpop.f32.mrb[22].mxu0 }
 0x29f   : > { %v698_v60 = vmax.f32 %v694_v52, %v1843_v59  ;;  %v1846_v61 = vpop.f32.mrb[23].mxu0 }
 0x2a0   : > { %v696_v62 = vmax.f32 %v692_v54, %v1846_v61 }
 0x2a4   : > { %v1849_v63 = vpop.f32.mrb[24].mxu0 }
 0x2a5   : > { %v701_v0 = vmax.f32 %v697_v56, %v1849_v63  ;;  %v1852_v1 = vpop.f32.mrb[25].mxu0 }
 0x2a6   : > { %v699_v2 = vmax.f32 %v695_v58, %v1852_v1  ;;  %v1855_v3 = vpop.f32.mrb[26].mxu0 }
 0x2a7   : > { %v702_v4 = vmax.f32 %v698_v60, %v1855_v3  ;;  %v1858_v5 = vpop.f32.mrb[27].mxu0 }
 0x2a8   : > { %v700_v6 = vmax.f32 %v696_v62, %v1858_v5 }
 0x2ac   : > { %v1861_v7 = vpop.f32.mrb[28].mxu0 }
 0x2ad   : > { %v705_v8 = vmax.f32 %v701_v0, %v1861_v7  ;;  %v1864_v9 = vpop.f32.mrb[29].mxu0 }
 0x2ae   : > { %v703_v10 = vmax.f32 %v699_v2, %v1864_v9  ;;  %v1867_v11 = vpop.f32.mrb[30].mxu0 }
 0x2af   : > { %v706_v12 = vmax.f32 %v702_v4, %v1867_v11  ;;  %v1870_v13 = vpop.f32.mrb[31].mxu0 }
 0x2b0   : > { %v704_v14 = vmax.f32 %v700_v6, %v1870_v13 }
 0x2b1   : > { %v708_v15 = vmax.f32 %v705_v8, %v706_v12 }
 0x2b2   : > { %v707_v16 = vmax.f32 %v703_v10, %v704_v14 }
 0x2b4   : > { %v709_v17 = vmax.f32 %v707_v16, %v708_v15 }
 0x2b6   : > { %v710_v23 = vrot.slane %v709_v17, 4 }
 0x2b8   : > { %v711_v25 = vmax.f32 %v709_v17, %v710_v23 }
 0x2ba   : > { %v712_v27 = vrot.slane %v711_v25, 2 }
 0x2bc   : > { %v713_v29 = vmax.f32 %v711_v25, %v712_v27 }
 0x2be   : > { %v714_v31 = vrot.slane %v713_v29, 1 }
 0x2c0   : > { %v1873_v33 = vmax.f32 %v713_v29, %v714_v31 }
 0x2c2   : > { %v716_v35 = vsub.f32 %v1779_v19, %v1873_v33  ;;  %v717_v37 = vsub.f32 %v1783_v21, %v1873_v33  ;;  %v718_v39 = vsub.f32 %v1777_v18, %v1873_v33  ;;  %v719_v41 = vsub.f32 %v1781_v20, %v1873_v33 }
 0x2c3   : > { %v720_v43 = vsub.f32 %v1789_v24, %v1873_v33  ;;  %v721_v45 = vsub.f32 %v1797_v28, %v1873_v33  ;;  %v722_v47 = vsub.f32 %v1785_v22, %v1873_v33  ;;  %v723_v19 = vsub.f32 %v1793_v26, %v1873_v33 }
 0x2c4   : > { %v724_v21 = vsub.f32 %v1804_v32, %v1873_v33  ;;  %v725_v18 = vsub.f32 %v1810_v36, %v1873_v33  ;;  %v726_v20 = vsub.f32 %v1801_v30, %v1873_v33  ;;  %v727_v24 = vsub.f32 %v1807_v34, %v1873_v33 }
 0x2c5   : > { %v728_v28 = vsub.f32 %v1816_v40, %v1873_v33  ;;  %v729_v22 = vsub.f32 %v1822_v44, %v1873_v33  ;;  %v730_v26 = vsub.f32 %v1813_v38, %v1873_v33  ;;  %v731_v32 = vsub.f32 %v1819_v42, %v1873_v33 }
 0x2c6   : > { %v732_v36 = vsub.f32 %v1828_v48, %v1873_v33  ;;  %v733_v30 = vsub.f32 %v1834_v53, %v1873_v33  ;;  %v734_v34 = vsub.f32 %v1825_v46, %v1873_v33  ;;  %v735_v40 = vsub.f32 %v1831_v50, %v1873_v33 }
 0x2c7   : > { %v736_v44 = vsub.f32 %v1840_v57, %v1873_v33  ;;  %v737_v38 = vsub.f32 %v1846_v61, %v1873_v33  ;;  %v738_v42 = vsub.f32 %v1837_v55, %v1873_v33  ;;  %v739_v48 = vsub.f32 %v1843_v59, %v1873_v33 }
 0x2c8   : > { %v740_v49 = vsub.f32 %v1852_v1, %v1873_v33  ;;  %v741_v46 = vsub.f32 %v1858_v5, %v1873_v33  ;;  %v742_v50 = vsub.f32 %v1849_v63, %v1873_v33  ;;  %v743_v51 = vsub.f32 %v1855_v3, %v1873_v33 }
 0x2c9   : > { %v744_v52 = vsub.f32 %v1864_v9, %v1873_v33  ;;  %v745_v53 = vsub.f32 %v1870_v13, %v1873_v33  ;;  %v746_v54 = vsub.f32 %v1861_v7, %v1873_v33  ;;  %v747_v56 = vsub.f32 %v1867_v11, %v1873_v33 }
 0x2ca   : > { %v748_v57 = vmul.f32 1.442695, %v716_v35  ;;  %v750_v58 = vmul.f32 1.442695, %v717_v37  ;;  %v752_v60 = vmul.f32 1.442695, %v718_v39 }
 0x2cb   : > { %v754_v62 = vmul.f32 1.442695, %v719_v41  ;;  %v756_v0 = vmul.f32 1.442695, %v720_v43  ;;  %v758_v2 = vmul.f32 1.442695, %v721_v45 }
 0x2cc   : > { %1297 = vpow2.f32 %v748_v57  ;;  %v760_v4 = vmul.f32 1.442695, %v722_v47  ;;  %v762_v6 = vmul.f32 1.442695, %v723_v19  ;;  %v764_v8 = vmul.f32 1.442695, %v724_v21 }
 0x2cd   : > { %1299 = vpow2.f32 %v750_v58  ;;  %v766_v10 = vmul.f32 1.442695, %v725_v18  ;;  %v768_v12 = vmul.f32 1.442695, %v726_v20  ;;  %v770_v14 = vmul.f32 1.442695, %v727_v24 }
 0x2ce   : > { %1301 = vpow2.f32 %v752_v60  ;;  %v772_v15 = vmul.f32 1.442695, %v728_v28  ;;  %v774_v16 = vmul.f32 1.442695, %v729_v22  ;;  %v776_v23 = vmul.f32 1.442695, %v730_v26 }
 0x2cf   : > { %1303 = vpow2.f32 %v754_v62  ;;  %v778_v27 = vmul.f32 1.442695, %v731_v32  ;;  %v780_v31 = vmul.f32 1.442695, %v732_v36  ;;  %v782_v41 = vmul.f32 1.442695, %v733_v30 }
 0x2d0   : > { %1305 = vpow2.f32 %v756_v0  ;;  %v784_v45 = vmul.f32 1.442695, %v734_v34  ;;  %v786_v18 = vmul.f32 1.442695, %v735_v40  ;;  %v788_v24 = vmul.f32 1.442695, %v736_v44 }
 0x2d1   : > { %1307 = vpow2.f32 %v758_v2  ;;  %v790_v32 = vmul.f32 1.442695, %v737_v38  ;;  %v792_v30 = vmul.f32 1.442695, %v738_v42  ;;  %v794_v61 = vmul.f32 1.442695, %v739_v48 }
 0x2d2   : > { %1309 = vpow2.f32 %v760_v4  ;;  %v796_v55 = vmul.f32 1.442695, %v740_v49  ;;  %v798_v59 = vmul.f32 1.442695, %v741_v46  ;;  %v800_v1 = vmul.f32 1.442695, %v742_v50 }
 0x2d3   : > { %1311 = vpow2.f32 %v762_v6  ;;  %v802_v5 = vmul.f32 1.442695, %v743_v51  ;;  %v804_v63 = vmul.f32 1.442695, %v744_v52  ;;  %v806_v3 = vmul.f32 1.442695, %v745_v53 }
 0x2d4   : > { %1313 = vpow2.f32 %v764_v8  ;;  %v808_v4 = vmul.f32 1.442695, %v746_v54  ;;  %v810_v8 = vmul.f32 1.442695, %v747_v56 }
 0x2d5   : > { %1315 = vpow2.f32 %v766_v10 }
 0x2d6   : > { %v1939_v17 = vpop.eup %1297  ;;  %1317 = vpow2.f32 %v768_v12 }
 0x2d7   : > { %v1941_v25 = vpop.eup %1299  ;;  %1319 = vpow2.f32 %v770_v14 }
 0x2d8   : > { %v1943_v29 = vpop.eup %1301  ;;  %1321 = vpow2.f32 %v772_v15  ;;  %v812_v35 = vadd.f32 %v1941_v25, %v1939_v17  ;;  %v853_v37 = vpack.c.bf16 %v1941_v25, %v1939_v17 }
 0x2d9   : > { %v1949_v39 = vpop.eup %1303  ;;  %1323 = vpow2.f32 %v774_v16 }
 0x2da   : > { %v1951_v43 = vpop.eup %1305  ;;  %1325 = vpow2.f32 %v776_v23  ;;  %v813_v47 = vadd.f32 %v1943_v29, %v812_v35  ;;  %v854_v19 = vpack.c.bf16 %v1949_v39, %v1943_v29 }
 0x2db   : > { %v1956_v21 = vpop.eup %1307  ;;  %1327 = vpow2.f32 %v778_v27 }
 0x2dc   : > { %v1958_v20 = vpop.eup %1309  ;;  %1329 = vpow2.f32 %v780_v31  ;;  %v814_v28 = vadd.f32 %v1949_v39, %v813_v47  ;;  %v855_v22 = vpack.c.bf16 %v1956_v21, %v1951_v43 }
 0x2dd   : > { %v1963_v26 = vpop.eup %1311  ;;  %1331 = vpow2.f32 %v782_v41 }
 0x2de   : > { %v1968_v36 = vpop.eup %1313  ;;  %1333 = vpow2.f32 %v784_v45  ;;  %v815_v34 = vadd.f32 %v1951_v43, %v814_v28  ;;  %v856_v40 = vpack.c.bf16 %v1963_v26, %v1958_v20 }
 0x2df   : > { %v1976_v44 = vpop.eup %1315  ;;  %1335 = vpow2.f32 %v786_v18 }
 0x2e0   : > { %v1981_v38 = vpop.eup %1317  ;;  %1337 = vpow2.f32 %v788_v24  ;;  %v816_v42 = vadd.f32 %v1956_v21, %v815_v34  ;;  %v857_v57 = vpack.c.bf16 %v1976_v44, %v1968_v36 }
 0x2e1   : > { %v1989_v58 = vpop.eup %1319  ;;  %1339 = vpow2.f32 %v790_v32 }
 0x2e2   : > { %v1994_v48 = vpop.eup %1321  ;;  %1341 = vpow2.f32 %v792_v30  ;;  %v817_v49 = vadd.f32 %v1958_v20, %v816_v42  ;;  %v858_v60 = vpack.c.bf16 %v1989_v58, %v1981_v38 }
 0x2e3   : > { %v2002_v62 = vpop.eup %1323  ;;  %1343 = vpow2.f32 %v794_v61 }
 0x2e4   : > { %v2007_v46 = vpop.eup %1325  ;;  %1345 = vpow2.f32 %v796_v55  ;;  %v818_v50 = vadd.f32 %v1963_v26, %v817_v49  ;;  %v859_v0 = vpack.c.bf16 %v2002_v62, %v1994_v48 }
 0x2e5   : > { %v2015_v2 = vpop.eup %1327  ;;  %1347 = vpow2.f32 %v798_v59 }
 0x2e6   : > { %v1330_v51 = vpop.eup %1329  ;;  %1349 = vpow2.f32 %v800_v1  ;;  %v819_v9 = vadd.f32 %v1968_v36, %v818_v50  ;;  %v860_v52 = vpack.c.bf16 %v2015_v2, %v2007_v46  ;;  %v849_v36 = vld [vmem:[#allocation4] sm:$0xff] }
 0x2e7   : > { %v1332_v6 = vpop.eup %1331  ;;  %1351 = vpow2.f32 %v802_v5 }
 0x2e8   : > { %v1334_v10 = vpop.eup %1333  ;;  %1353 = vpow2.f32 %v804_v63  ;;  %v820_v13 = vadd.f32 %v1976_v44, %v819_v9  ;;  %v861_v53 = vpack.c.bf16 %v1332_v6, %v1330_v51  ;;  %v852_v44 = vld [vmem:[#allocation4 + $0x18] sm:$0xff] }
 0x2e9   : > { %v1336_v12 = vpop.eup %1335  ;;  %1355 = vpow2.f32 %v806_v3 }
 0x2ea   : > { %v1338_v7 = vpop.eup %1337  ;;  %1357 = vpow2.f32 %v808_v4  ;;  %v821_v54 = vadd.f32 %v1981_v38, %v820_v13  ;;  %1109 = vmatprep.subr.bf16.mxu1 %v861_v53  ;;  %v862_v14 = vpack.c.bf16 %v1336_v12, %v1334_v10  ;;  %v930_v4 = vstv %s923_s16  ;;  %v927_v53 = vld [vmem:[%s2059_s30 + $0x10] sm:$0xff]  ;;  %s1523_s16 = smov [#allocation9]  }
 0x2eb   : > { %v1340_v15 = vpop.eup %1339  ;;  %1359 = vpow2.f32 %v810_v8  ;;  %1110 = vmatpush3.bf16.msra.mxu1 %v853_v37  ;;  %v926_v8 = vld [vmem:[%s2059_s30] sm:$0xff]  ;;  %s1397_s20 = sshll.u32 %s1523_s16, 4  ;;  %s1398_s20 = int_to_ptr.vmem [resolvable:$false] %s1397_s20 }
 0x2ec   : > { %v1342_v11 = vpop.eup %1341  ;;  %v822_v33 = vadd.f32 %v1989_v58, %v821_v54  ;;  %1111 = vmatprep.subr.bf16.mxu1 %v862_v14  ;;  %v863_v56 = vpack.c.bf16 %v1340_v15, %v1338_v7  ;;  %v851_v58 = vld [vmem:[#allocation4 + $0x10] sm:$0xff]  ;;  %p1400_p1 = scmp.lt.s32.totalorder %s2070_s8, %s1398_s20 }
 0x2ed   : > { %v1344_v16 = vpop.eup %1343 }
 0x2ee   : > { %v1346_v23 = vpop.eup %1345  ;;  %v823_v27 = vadd.f32 %v1994_v48, %v822_v33  ;;  %v864_v31 = vpack.c.bf16 %v1344_v16, %v1342_v11 }
 0x2ef   : > { %v1348_v35 = vpop.eup %1347  ;;  %1112 = vmatpush3.bf16.msra.mxu1 %v854_v19 }
 0x2f0   : > { %v1350_v41 = vpop.eup %1349  ;;  %v824_v45 = vadd.f32 %v2002_v62, %v823_v27  ;;  %1113 = vmatprep.subr.bf16.mxu1 %v863_v56  ;;  %v865_v17 = vpack.c.bf16 %v1348_v35, %v1346_v23  ;;  %v928_v27 = vld [vmem:[%s2059_s30 + $0x20] sm:$0xff] }
 0x2f1   : > { %v1352_v25 = vpop.eup %1351 }
 0x2f2   : > { %v1354_v37 = vpop.eup %1353  ;;  %v825_v47 = vadd.f32 %v2007_v46, %v824_v45  ;;  %v866_v18 = vpack.c.bf16 %v1352_v25, %v1350_v41 }
 0x2f3   : > { %v1356_v24 = vpop.eup %1355  ;;  %1114 = vmatpush3.bf16.msra.mxu1 %v855_v22 }
 0x2f4   : > { %v1358_v28 = vpop.eup %1357  ;;  %v826_v32 = vadd.f32 %v2015_v2, %v825_v47  ;;  %1115 = vmatprep.subr.bf16.mxu1 %v864_v31  ;;  %v867_v29 = vpack.c.bf16 %v1356_v24, %v1354_v37 }
 0x2f5   : > { %v1360_v39 = vpop.eup %1359 }
 0x2f6   : > { %v827_v19 = vadd.f32 %v1330_v51, %v826_v32  ;;  %v868_v30 = vpack.c.bf16 %v1360_v39, %v1358_v28 }
 0x2f7   : > { %1116 = vmatpush3.bf16.msra.mxu1 %v856_v40 }
 0x2f8   : > { %v828_v34 = vadd.f32 %v1332_v6, %v827_v19  ;;  %1117 = vmatprep.subr.bf16.mxu1 %v865_v17 }
 0x2fa   : > { %v829_v61 = vadd.f32 %v1334_v10, %v828_v34 }
 0x2fb   : > { %1118 = vmatpush3.bf16.msra.mxu1 %v857_v57 }
 0x2fc   : > { %v830_v43 = vadd.f32 %v1336_v12, %v829_v61  ;;  %1119 = vmatprep.subr.bf16.mxu1 %v866_v18 }
 0x2fe   : > { %v831_v21 = vadd.f32 %v1338_v7, %v830_v43 }
 0x2ff   : > { %1120 = vmatpush3.bf16.msra.mxu1 %v858_v60 }
 0x300   : > { %v832_v22 = vadd.f32 %v1340_v15, %v831_v21  ;;  %1121 = vmatprep.subr.bf16.mxu1 %v867_v29 }
 0x302   : > { %v833_v55 = vadd.f32 %v1342_v11, %v832_v22 }
 0x303   : > { %1122 = vmatpush3.bf16.msra.mxu1 %v859_v0 }
 0x304   : > { %v834_v20 = vadd.f32 %v1344_v16, %v833_v55  ;;  %1123 = vmatprep.subr.bf16.mxu1 %v868_v30 }
 0x306   : > { %v835_v26 = vadd.f32 %v1346_v23, %v834_v20 }
 0x307   : > { %1124 = vmatpush3.bf16.msra.mxu1 %v860_v52 }
 0x308   : > { %v836_v40 = vadd.f32 %v1348_v35, %v835_v26 }
 0x30a   : > { %v837_v42 = vadd.f32 %v1350_v41, %v836_v40  ;;  %902 = vmatmul.mubr.bf16.vlgmr.msra.gmra.mrb[0].mxu1 %v849_v36  ;;  %v929_v41 = vld [vmem:[%s2059_s30 + $0x30] sm:$0xff]  ;;  %s1399_s30 = scalar_lea.vmem %s1398_s20, 1024 }
 0x30b   : > { %909 = vmatprep.mubr.bf16.mxu1 %v852_v44  ;;  %p1401_p6 = scmp.lt.s32.totalorder %s1399_s30, %s1393_s5 }
 0x30c   : > { %v838_v38 = vadd.f32 %v1352_v25, %v837_v42 }
 0x30d   : > { %p1402_p9 = por %p1401_p6, %p1400_p1 }
 0x30e   : > { %v839_v57 = vadd.f32 %v1354_v37, %v838_v38 }
 0x30f   : > { %p1403_p3 = pnand %p1402_p9, %p1396_p0 }
 0x310   : > { %v840_v59 = vadd.f32 %v1356_v24, %v839_v57 }
 0x312   : > { %v841_v1 = vadd.f32 %v1358_v28, %v840_v59  ;;  %910 = vmatmul.mubr.bf16.gmra.mrb[4].mxu1 %v851_v58 }
 0x314   : > { %v842_v48 = vadd.f32 %v1360_v39, %v841_v1 }
 0x316   : > { %v843_v49 = vrot.slane %v842_v48, 4 }
 0x318   : > { %v844_v60 = vadd.f32 %v843_v49, %v842_v48 }
 0x31a   : > { %v845_v62 = vrot.slane %v844_v60, 2 }
 0x31c   : > { %v846_v5 = vadd.f32 %v845_v62, %v844_v60 }
 0x31e   : > { %v847_v46 = vrot.slane %v846_v5, 1 }
 0x320   : > { %v848_v63 = vadd.f32 %v847_v46, %v846_v5 }
 0x322   : > { %1361 = vrcp.f32 %v848_v63 }
 0x32c   : > { %v1362_v51 = vpop.eup %1361 }
 0x3dd   : > { %v1125_v50 = vpop.f32.mrb[0].mxu1 }
 0x3de   : > { %v1126_v0 = vpop.f32.mrb[1].mxu1 }
 0x3df   : > { %v1127_v2 = vadd.f32 %v1126_v0, %v1125_v50  ;;  %v1128_v3 = vpop.f32.mrb[2].mxu1 }
 0x3e0   : > { %v1129_v9 = vpop.f32.mrb[3].mxu1 }
 0x3e1   : > { %v919_v52 = vmul.f32 %v1362_v51, %v1127_v2  ;;  %v1130_v6 = vadd.f32 %v1129_v9, %v1128_v3 }
 0x3e3   : > { %v931_v10 = vmul.f32 %v930_v4, %v919_v52  ;;  %v920_v13 = vmul.f32 %v1362_v51, %v1130_v6 }
 0x3e5   : > { %v935_v12 = vadd.f32 %v931_v10, %v926_v8  ;;  %v932_v7 = vmul.f32 %v930_v4, %v920_v13  ;;  %v1131_v54 = vpop.f32.mrb[4].mxu1 }
 0x3e6   : > { %v1132_v14 = vpop.f32.mrb[5].mxu1 }
 0x3e7   : > { %939 = vst [vmem:[%s1711_s11] sm:$0xff] %v935_v12  ;;  %v936_v15 = vadd.f32 %v932_v7, %v927_v53  ;;  %v1133_v11 = vadd.f32 %v1132_v14, %v1131_v54  ;;  %v1134_v33 = vpop.f32.mrb[6].mxu1 }
 0x3e8   : > { %v1135_v56 = vpop.f32.mrb[7].mxu1 }
 0x3e9   : > { %940 = vst [vmem:[%s1711_s11 + $0x8] sm:$0xff] %v936_v15  ;;  %v921_v16 = vmul.f32 %v1362_v51, %v1133_v11  ;;  %v1136_v23 = vadd.f32 %v1135_v56, %v1134_v33 }
 0x3eb   : > { %v933_v31 = vmul.f32 %v930_v4, %v921_v16  ;;  %v922_v35 = vmul.f32 %v1362_v51, %v1136_v23 }
 0x3ed   : > { %v937_v45 = vadd.f32 %v933_v31, %v928_v27  ;;  %v934_v17 = vmul.f32 %v930_v4, %v922_v35 }
 0x3ef   : > { %941 = vst [vmem:[%s1711_s11 + $0x10] sm:$0xff] %v937_v45  ;;  %v938_v25 = vadd.f32 %v934_v17, %v929_v41 }
 0x3f1   : > { %942 = vst [vmem:[%s1711_s11 + $0x18] sm:$0xff] %v938_v25 }
 0x3f2   : > { %1406 = shalt.err (!%p1403_p3)
}
 0x3f3   : > { %s1407_s28 = scalar_lea.hbm %s2075_s23, 512  ;;  %s1411_s9 = scalar_lea.hbm %s2146_s4, 2048 }
 0x3f4   : > { %p1408_p11 = scmp.ne.s32.totalorder %s2075_s23, %s1407_s28  ;;  %p1412_p8 = scmp.lt.u32.totalorder %s2075_s23, %s2146_s4 }
 0x3f5   : > { %p1413_p10 = scmp.lt.u32.totalorder %s1411_s9, %s1407_s28  ;;  %p1415_p7 = scmp.lt.u32.totalorder %s1407_s28, %s2075_s23 }
 0x3f6   : > { %p1409_p13 = pnand %p1408_p11, %p2156_p2 }
 0x3f7   : > { %p1414_p12 = por %p1413_p10, %p1412_p8 }
 0x3f8   : > { %p1410_p5 = pneg %p1409_p13 }
 0x3f9   : > { %p1416_p4 = por %p1415_p7, %p1414_p12 }
 0x3fb   : > { %p1417_p0 = pnand %p1416_p4, %p1410_p5 }
 0x3fd   : > { %1420 = shalt.err (!%p1417_p0)
}
 0x3fe   : > { %s1524_s27 = smov 128   ;;  %s1525_s5 = smov 256  }
 0x3ff   : > { %s1526_s16 = smov 8  }
 0x400   : > { %1186 = dma.vmem_to_hbm [thread:$0]  (%p2156_p2), %s2070_s8, 512, %s2075_s23, %s2081_s6, %s1524_s27, %s1525_s5, %s1526_s16  }
 0x401 PF: > { %p1197_p1 = scmp.ge.s32.totalorder %s1515_s26, 2  ;;  %s973_s20 = sand.u32 1, %s1475_s17  }
 0x402   : > { %p2157_p6 = scmp.ne.s32.totalorder %s2153_s15, 0  ;;  %s974_s30 = scalar_lea.sflag [#allocation8], %s973_s20 }
 0x404   : > { %p1193_p9 = pnand %p1197_p1, %p2157_p6 }
 0x406   : > { %1470 = dma.done.wait (!%p1193_p9), %s974_s30, 512  }
 0x407   : > { %1472 = vsyncadd (!%p1193_p9), %s974_s30, 4294966784  ;;  %s21_s26 = sadd.s32 1, %s1515_s26   ;;  %s2158_s12 = sld [smem:[#allocation12_spill]] }
 0x408   : > { %p18_p3 = scmp.ge.s32.totalorder %s21_s26, 6   ;;  %s2159_s17 = smov %s1479_s18 }
 0x409   : > { %s2160_s18 = smov %s1483_s19  ;;  %s2161_s19 = smov %s1645_s14 }
 0x40a   : > { %s2162_s20 = smov %s1491_s21  ;;  %s2163_s21 = smov %s1495_s22 }
 0x40b   : > { %s2164_s22 = smov %s1642_s13  ;;  %s2165_s23 = smov %s1507_s3 }
 0x40c   : > { %s2166_s24 = smov %s1511_s25  ;;  %s2167_s3 = smov %s2170_s29 }
 0x40d   : > { %s2168_s25 = smov %s2158_s12  ;;  %20 = sbr.rel (!%p18_p3) target bundleno = 11 (0xb), region = 87 }
 0x414   :  { %979 = vsyncpa [#allocation7], 1 }
 0x415   :  { %981 = vsyncpa [#allocation7 + $0x1], 1 }
 0x416   :  { %982 = vsyncpa [#allocation8], 1 }
 0x417   :  { %984 = vsyncpa [#allocation8 + $0x1], 1 }

</bundles_post_ra>
